<compile_context>
chip_gen: v7x
topology: tpu7x:2x2x1
jax: 0.10.0
libtpu: 0.0.40
codegen_flags: <defaults>
</compile_context>

<pallas_src>
import numpy as np
import jax
import jax.numpy as jnp
from jax.experimental import pallas as pl
from jax.experimental.pallas import tpu as pltpu

COLS = 512          # lane-major width (multiple of 128)
ROW_BLK_MAX = 256   # max sublane rows per block -> 512 KiB f32 per input block
SUBLANE_PAD = 32    # int8 min tile is (32, 128); keep row counts multiples of 32
NSPLIT = 2          # leading "parallel" grid axis (2 TCs on v7x; cheap elsewhere)


def _round_up(x, m):
    return -(-x // m) * m


def _pairpush_kernel(diff_ref, sign_ref, code_ref, out_ref, acc_ref):
    """grid = (split, row_block).

    acc_ref: (6, R, COLS) f32 VMEM accumulator
      [0]=pp sum  [1]=pp count  [2]=pn sum  [3]=pn count  [4]=nn sum  [5]=nn count
    out_ref: (1, 8, 128) per-split partials; row i (broadcast over lanes) = acc[i] total.
    """
    k = pl.program_id(1)

    @pl.when(k == 0)
    def _init():
        acc_ref[...] = jnp.zeros_like(acc_ref)

    # --- elementwise hot path: VPU/EUP only, no cross-lane work per step ---
    x = -sign_ref[...] * diff_ref[...]
    # nn.Softplus(beta=1, threshold=50): x if x > 50 else log1p(exp(x))
    sp = jnp.where(x > 50.0, x, jnp.log1p(jnp.exp(jnp.minimum(x, 50.0))))

    code = code_ref[...].astype(jnp.int32)   # 0=pp, 1=pn, 2=nn, 3=padding/none
    zeros = jnp.zeros_like(sp)
    ones = jnp.ones_like(sp)
    for g in range(3):
        m = code == g
        acc_ref[2 * g] += jnp.where(m, sp, zeros)
        acc_ref[2 * g + 1] += jnp.where(m, ones, zeros)

    # --- single cross-lane (XLU) reduction per split, once per kernel ---
    @pl.when(k == pl.num_programs(1) - 1)
    def _finalize():
        row = jax.lax.broadcasted_iota(jnp.int32, (8, 128), 0)
        res = jnp.zeros((8, 128), jnp.float32)
        for i in range(6):
            res = jnp.where(row == i, jnp.sum(acc_ref[i]), res)
        out_ref[0] = res


def pair_push_loss(diff, labels1, labels2, sign, alpha=0.5, beta=0.1):
    diff = jnp.asarray(diff, jnp.float32).reshape(-1)
    sign = jnp.asarray(sign, jnp.float32).reshape(-1)
    l1 = jnp.asarray(labels1, jnp.int32).reshape(-1)
    l2 = jnp.asarray(labels2, jnp.int32).reshape(-1)

    # Single int8 group code: 0=pp, 1=pn, 2=nn, 3=none (also used as pad value).
    same = l1 == l2
    code = jnp.where(same & (l1 == 1), 0,
           jnp.where(jnp.logical_not(same), 1,
           jnp.where(same & (l1 == 0), 2, 3))).astype(jnp.int8)

    n = diff.shape[0]
    rows_needed = max(1, -(-n // COLS))
    # Pick row-block size / number of row-blocks per split (all static Python ints).
    r_blk0 = min(ROW_BLK_MAX, _round_up(-(-rows_needed // NSPLIT), SUBLANE_PAD))
    kb_per_split = -(-rows_needed // (NSPLIT * r_blk0))
    r_blk = min(ROW_BLK_MAX,
                _round_up(-(-rows_needed // (NSPLIT * kb_per_split)), SUBLANE_PAD))
    rows_total = NSPLIT * kb_per_split * r_blk
    n_pad = rows_total * COLS
    pad = n_pad - n

    diff_p = jnp.pad(diff, (0, pad)).reshape(rows_total, COLS)
    sign_p = jnp.pad(sign, (0, pad)).reshape(rows_total, COLS)
    code_p = jnp.pad(code, (0, pad), constant_values=3).reshape(rows_total, COLS)

    in_map = lambda s, k: (s * kb_per_split + k, 0)

    partials = pl.pallas_call(
        _pairpush_kernel,
        out_shape=jax.ShapeDtypeStruct((NSPLIT, 8, 128), jnp.float32),
        grid_spec=pltpu.PrefetchScalarGridSpec(
            num_scalar_prefetch=0,
            grid=(NSPLIT, kb_per_split),
            in_specs=[
                pl.BlockSpec((r_blk, COLS), in_map),  # diff
                pl.BlockSpec((r_blk, COLS), in_map),  # sign
                pl.BlockSpec((r_blk, COLS), in_map),  # int8 group code
            ],
            out_specs=pl.BlockSpec((1, 8, 128), lambda s, k: (s, 0, 0)),
            scratch_shapes=[pltpu.VMEM((6, r_blk, COLS), jnp.float32)],
        ),
        compiler_params=pltpu.CompilerParams(
            dimension_semantics=("parallel", "arbitrary")),
    )(diff_p, sign_p, code_p)

    # Combine the per-split partials (rows 0..5, any lane) into the scalar loss.
    totals = jnp.sum(partials[:, :6, 0], axis=0)  # (6,)

    def term(coef, s, c):
        return jnp.where(c > 0.0, coef * s / jnp.maximum(c, 1.0), 0.0)

    loss = term(alpha, totals[0], totals[1])
    loss += term(1.0 - alpha - beta, totals[2], totals[3])
    loss += term(beta, totals[4], totals[5])
    return loss


def _reference_loss(diff, labels1, labels2, sign, alpha=0.5, beta=0.1):
    diff = np.asarray(diff, np.float64)
    sign = np.asarray(sign, np.float64)
    l1 = np.asarray(labels1)
    l2 = np.asarray(labels2)
    y = l1 == l2

    def sp(x):
        return np.where(x > 50.0, x, np.log1p(np.exp(np.minimum(x, 50.0))))

    pp = (y == 1) & (l1 == 1)
    nn = (y == 1) & (l1 == 0)
    pn = (y == 0)
    bloss = 0.0
    if pp.sum():
        bloss = alpha * np.mean(sp(-sign[pp] * diff[pp]))
    if pn.sum():
        bloss += (1.0 - alpha - beta) * np.mean(sp(-sign[pn] * diff[pn]))
    if nn.sum():
        bloss += beta * np.mean(sp(-sign[nn] * diff[nn]))
    return bloss


if __name__ == "__main__":
    key = jax.random.PRNGKey(0)

    # --- small case (matches the module's typical per-batch pair count) ---
    k1, k2, k3, k4 = jax.random.split(key, 4)
    N = 8
    diff = jax.random.normal(k1, (N,), dtype=jnp.float32) * 2.0
    sign = jnp.where(jax.random.bernoulli(k2, 0.5, (N,)), 1.0, -1.0).astype(jnp.float32)
    labels1 = jax.random.bernoulli(k3, 0.5, (N,)).astype(jnp.int32)
    labels2 = jax.random.bernoulli(k4, 0.5, (N,)).astype(jnp.int32)

    loss = jax.block_until_ready(pair_push_loss(diff, labels1, labels2, sign, 0.5, 0.1))
    ref = _reference_loss(np.array(diff), np.array(labels1),
                          np.array(labels2), np.array(sign), 0.5, 0.1)
    assert np.allclose(float(loss), float(ref), rtol=1e-4, atol=1e-5), (loss, ref)

    # --- larger case: exercises multiple row-blocks per split (kb_per_split > 1) ---
    k5, k6, k7, k8 = jax.random.split(jax.random.PRNGKey(1), 4)
    N2 = 300_000
    diff2 = jax.random.normal(k5, (N2,), dtype=jnp.float32) * 2.0
    sign2 = jnp.where(jax.random.bernoulli(k6, 0.5, (N2,)), 1.0, -1.0).astype(jnp.float32)
    labels1b = jax.random.bernoulli(k7, 0.5, (N2,)).astype(jnp.int32)
    labels2b = jax.random.bernoulli(k8, 0.5, (N2,)).astype(jnp.int32)

    loss2 = jax.block_until_ready(pair_push_loss(diff2, labels1b, labels2b, sign2, 0.5, 0.1))
    ref2 = _reference_loss(np.array(diff2), np.array(labels1b),
                           np.array(labels2b), np.array(sign2), 0.5, 0.1)
    assert np.allclose(float(loss2), float(ref2), rtol=1e-4, atol=1e-5), (loss2, ref2)

    print("KERNEL_OK")
</pallas_src>

<mosaic_0001>
module attributes {stable_mosaic.version = 11 : i64} {
  func.func @_pairpush_kernel(%arg0: i32, %arg1: i32, %arg2: memref<32x512xf32, #tpu.memory_space<vmem>>, %arg3: memref<32x512xf32, #tpu.memory_space<vmem>>, %arg4: memref<32x512xi8, #tpu.memory_space<vmem>>, %arg5: memref<1x8x128xf32, #tpu.memory_space<vmem>>, %arg6: memref<6x32x512xf32, #tpu.memory_space<vmem>>) attributes {dimension_semantics = [#tpu.dimension_semantics<parallel>, #tpu.dimension_semantics<arbitrary>], iteration_bounds = array<i64: 2, 1>, scalar_prefetch = 0 : i64, scratch_operands = 1 : i64, tpu.core_type = #tpu.core_type<tc>, window_params = [{transform_indices = @transform_0, window_bounds = array<i64: 32, 512>}, {transform_indices = @transform_1, window_bounds = array<i64: 32, 512>}, {transform_indices = @transform_2, window_bounds = array<i64: 32, 512>}, {transform_indices = @transform_3, window_bounds = array<i64: 1, 8, 128>}]} {
    %c0_i32 = arith.constant 0 : i32
    %0 = arith.cmpi eq, %arg1, %c0_i32 : i32
    %1 = arith.extui %0 : i1 to i32
    %c0_i32_0 = arith.constant 0 : i32
    %2 = arith.cmpi ne, %1, %c0_i32_0 : i32
    scf.if %2 {
      %cst_44 = arith.constant 0.000000e+00 : f32
      %70 = vector.broadcast %cst_44 : f32 to vector<6x32x512xf32>
      %c0_45 = arith.constant 0 : index
      %c0_46 = arith.constant 0 : index
      %c0_47 = arith.constant 0 : index
      %71 = vector.load %arg6[%c0_45, %c0_46, %c0_47] : memref<6x32x512xf32, #tpu.memory_space<vmem>>, vector<6x32x512xf32>
      tpu.vector_store %arg6[%c0_45, %c0_46, %c0_47], %70 {strides = array<i32>} : memref<6x32x512xf32, #tpu.memory_space<vmem>>, vector<6x32x512xf32>,
    } else {
    }
    %c0 = arith.constant 0 : index
    %c0_1 = arith.constant 0 : index
    %3 = vector.load %arg3[%c0, %c0_1] : memref<32x512xf32, #tpu.memory_space<vmem>>, vector<32x512xf32>
    %cst = arith.constant 0.000000e+00 : f32
    %4 = vector.broadcast %cst : f32 to vector<32x512xf32>
    %5 = arith.subf %4, %3 : vector<32x512xf32>
    %c0_2 = arith.constant 0 : index
    %c0_3 = arith.constant 0 : index
    %6 = vector.load %arg2[%c0_2, %c0_3] : memref<32x512xf32, #tpu.memory_space<vmem>>, vector<32x512xf32>
    %7 = arith.mulf %5, %6 : vector<32x512xf32>
    %cst_4 = arith.constant 5.000000e+01 : f32
    %8 = vector.broadcast %cst_4 : f32 to vector<32x512xf32>
    %9 = arith.cmpf ogt, %7, %8 : vector<32x512xf32>
    %cst_5 = arith.constant 5.000000e+01 : f32
    %10 = vector.broadcast %cst_5 : f32 to vector<32x512xf32>
    %11 = arith.minimumf %7, %10 : vector<32x512xf32>
    %12 = math.exp %11 : vector<32x512xf32>
    %13 = math.log1p %12 : vector<32x512xf32>
    %14 = arith.select %9, %7, %13 : vector<32x512xi1>, vector<32x512xf32>
    %c0_6 = arith.constant 0 : index
    %c0_7 = arith.constant 0 : index
    %15 = vector.load %arg4[%c0_6, %c0_7] : memref<32x512xi8, #tpu.memory_space<vmem>>, vector<32x512xi8>
    %16 = arith.extsi %15 : vector<32x512xi8> to vector<32x512xi32>
    %cst_8 = arith.constant 0.000000e+00 : f32
    %17 = vector.broadcast %cst_8 : f32 to vector<32x512xf32>
    %cst_9 = arith.constant 1.000000e+00 : f32
    %18 = vector.broadcast %cst_9 : f32 to vector<32x512xf32>
    %c0_i32_10 = arith.constant 0 : i32
    %19 = vector.broadcast %c0_i32_10 : i32 to vector<32x512xi32>
    %20 = arith.cmpi eq, %16, %19 : vector<32x512xi32>
    %c0_11 = arith.constant 0 : index
    %c0_12 = arith.constant 0 : index
    %c0_13 = arith.constant 0 : index
    %21 = vector.load %arg6[%c0_11, %c0_12, %c0_13] : memref<6x32x512xf32, #tpu.memory_space<vmem>>, vector<1x32x512xf32>
    %22 = vector.shape_cast %21 : vector<1x32x512xf32> to vector<32x512xf32>
    %23 = arith.select %20, %14, %17 : vector<32x512xi1>, vector<32x512xf32>
    %24 = arith.addf %22, %23 : vector<32x512xf32>
    %c0_14 = arith.constant 0 : index
    %c0_15 = arith.constant 0 : index
    %c0_16 = arith.constant 0 : index
    %25 = vector.load %arg6[%c0_14, %c0_15, %c0_16] : memref<6x32x512xf32, #tpu.memory_space<vmem>>, vector<1x32x512xf32>
    %26 = vector.shape_cast %25 : vector<1x32x512xf32> to vector<32x512xf32>
    %27 = vector.shape_cast %24 : vector<32x512xf32> to vector<1x32x512xf32>
    tpu.vector_store %arg6[%c0_14, %c0_15, %c0_16], %27 {strides = array<i32>} : memref<6x32x512xf32, #tpu.memory_space<vmem>>, vector<1x32x512xf32>,
    %c1 = arith.constant 1 : index
    %c0_17 = arith.constant 0 : index
    %c0_18 = arith.constant 0 : index
    %28 = vector.load %arg6[%c1, %c0_17, %c0_18] : memref<6x32x512xf32, #tpu.memory_space<vmem>>, vector<1x32x512xf32>
    %29 = vector.shape_cast %28 : vector<1x32x512xf32> to vector<32x512xf32>
    %30 = arith.select %20, %18, %17 : vector<32x512xi1>, vector<32x512xf32>
    %31 = arith.addf %29, %30 : vector<32x512xf32>
    %c1_19 = arith.constant 1 : index
    %c0_20 = arith.constant 0 : index
    %c0_21 = arith.constant 0 : index
    %32 = vector.load %arg6[%c1_19, %c0_20, %c0_21] : memref<6x32x512xf32, #tpu.memory_space<vmem>>, vector<1x32x512xf32>
    %33 = vector.shape_cast %32 : vector<1x32x512xf32> to vector<32x512xf32>
    %34 = vector.shape_cast %31 : vector<32x512xf32> to vector<1x32x512xf32>
    tpu.vector_store %arg6[%c1_19, %c0_20, %c0_21], %34 {strides = array<i32>} : memref<6x32x512xf32, #tpu.memory_space<vmem>>, vector<1x32x512xf32>,
    %c1_i32 = arith.constant 1 : i32
    %35 = vector.broadcast %c1_i32 : i32 to vector<32x512xi32>
    %36 = arith.cmpi eq, %16, %35 : vector<32x512xi32>
    %c2 = arith.constant 2 : index
    %c0_22 = arith.constant 0 : index
    %c0_23 = arith.constant 0 : index
    %37 = vector.load %arg6[%c2, %c0_22, %c0_23] : memref<6x32x512xf32, #tpu.memory_space<vmem>>, vector<1x32x512xf32>
    %38 = vector.shape_cast %37 : vector<1x32x512xf32> to vector<32x512xf32>
    %39 = arith.select %36, %14, %17 : vector<32x512xi1>, vector<32x512xf32>
    %40 = arith.addf %38, %39 : vector<32x512xf32>
    %c2_24 = arith.constant 2 : index
    %c0_25 = arith.constant 0 : index
    %c0_26 = arith.constant 0 : index
    %41 = vector.load %arg6[%c2_24, %c0_25, %c0_26] : memref<6x32x512xf32, #tpu.memory_space<vmem>>, vector<1x32x512xf32>
    %42 = vector.shape_cast %41 : vector<1x32x512xf32> to vector<32x512xf32>
    %43 = vector.shape_cast %40 : vector<32x512xf32> to vector<1x32x512xf32>
    tpu.vector_store %arg6[%c2_24, %c0_25, %c0_26], %43 {strides = array<i32>} : memref<6x32x512xf32, #tpu.memory_space<vmem>>, vector<1x32x512xf32>,
    %c3 = arith.constant 3 : index
    %c0_27 = arith.constant 0 : index
    %c0_28 = arith.constant 0 : index
    %44 = vector.load %arg6[%c3, %c0_27, %c0_28] : memref<6x32x512xf32, #tpu.memory_space<vmem>>, vector<1x32x512xf32>
    %45 = vector.shape_cast %44 : vector<1x32x512xf32> to vector<32x512xf32>
    %46 = arith.select %36, %18, %17 : vector<32x512xi1>, vector<32x512xf32>
    %47 = arith.addf %45, %46 : vector<32x512xf32>
    %c3_29 = arith.constant 3 : index
    %c0_30 = arith.constant 0 : index
    %c0_31 = arith.constant 0 : index
    %48 = vector.load %arg6[%c3_29, %c0_30, %c0_31] : memref<6x32x512xf32, #tpu.memory_space<vmem>>, vector<1x32x512xf32>
    %49 = vector.shape_cast %48 : vector<1x32x512xf32> to vector<32x512xf32>
    %50 = vector.shape_cast %47 : vector<32x512xf32> to vector<1x32x512xf32>
    tpu.vector_store %arg6[%c3_29, %c0_30, %c0_31], %50 {strides = array<i32>} : memref<6x32x512xf32, #tpu.memory_space<vmem>>, vector<1x32x512xf32>,
    %c2_i32 = arith.constant 2 : i32
    %51 = vector.broadcast %c2_i32 : i32 to vector<32x512xi32>
    %52 = arith.cmpi eq, %16, %51 : vector<32x512xi32>
    %c4 = arith.constant 4 : index
    %c0_32 = arith.constant 0 : index
    %c0_33 = arith.constant 0 : index
    %53 = vector.load %arg6[%c4, %c0_32, %c0_33] : memref<6x32x512xf32, #tpu.memory_space<vmem>>, vector<1x32x512xf32>
    %54 = vector.shape_cast %53 : vector<1x32x512xf32> to vector<32x512xf32>
    %55 = arith.select %52, %14, %17 : vector<32x512xi1>, vector<32x512xf32>
    %56 = arith.addf %54, %55 : vector<32x512xf32>
    %c4_34 = arith.constant 4 : index
    %c0_35 = arith.constant 0 : index
    %c0_36 = arith.constant 0 : index
    %57 = vector.load %arg6[%c4_34, %c0_35, %c0_36] : memref<6x32x512xf32, #tpu.memory_space<vmem>>, vector<1x32x512xf32>
    %58 = vector.shape_cast %57 : vector<1x32x512xf32> to vector<32x512xf32>
    %59 = vector.shape_cast %56 : vector<32x512xf32> to vector<1x32x512xf32>
    tpu.vector_store %arg6[%c4_34, %c0_35, %c0_36], %59 {strides = array<i32>} : memref<6x32x512xf32, #tpu.memory_space<vmem>>, vector<1x32x512xf32>,
    %c5 = arith.constant 5 : index
    %c0_37 = arith.constant 0 : index
    %c0_38 = arith.constant 0 : index
    %60 = vector.load %arg6[%c5, %c0_37, %c0_38] : memref<6x32x512xf32, #tpu.memory_space<vmem>>, vector<1x32x512xf32>
    %61 = vector.shape_cast %60 : vector<1x32x512xf32> to vector<32x512xf32>
    %62 = arith.select %52, %18, %17 : vector<32x512xi1>, vector<32x512xf32>
    %63 = arith.addf %61, %62 : vector<32x512xf32>
    %c5_39 = arith.constant 5 : index
    %c0_40 = arith.constant 0 : index
    %c0_41 = arith.constant 0 : index
    %64 = vector.load %arg6[%c5_39, %c0_40, %c0_41] : memref<6x32x512xf32, #tpu.memory_space<vmem>>, vector<1x32x512xf32>
    %65 = vector.shape_cast %64 : vector<1x32x512xf32> to vector<32x512xf32>
    %66 = vector.shape_cast %63 : vector<32x512xf32> to vector<1x32x512xf32>
    tpu.vector_store %arg6[%c5_39, %c0_40, %c0_41], %66 {strides = array<i32>} : memref<6x32x512xf32, #tpu.memory_space<vmem>>, vector<1x32x512xf32>,
    %c0_i32_42 = arith.constant 0 : i32
    %67 = arith.cmpi eq, %arg1, %c0_i32_42 : i32
    %68 = arith.extui %67 : i1 to i32
    %c0_i32_43 = arith.constant 0 : i32
    %69 = arith.cmpi ne, %68, %c0_i32_43 : i32
    scf.if %69 {
      %70 = tpu.iota {dimensions = array<i32: 0>} : vector<8x128xi32>
      %cst_44 = arith.constant 0.000000e+00 : f32
      %71 = vector.broadcast %cst_44 : f32 to vector<8x128xf32>
      %c0_i32_45 = arith.constant 0 : i32
      %72 = vector.broadcast %c0_i32_45 : i32 to vector<8x128xi32>
      %73 = arith.cmpi eq, %70, %72 : vector<8x128xi32>
      %c0_46 = arith.constant 0 : index
      %c0_47 = arith.constant 0 : index
      %c0_48 = arith.constant 0 : index
      %74 = vector.load %arg6[%c0_46, %c0_47, %c0_48] : memref<6x32x512xf32, #tpu.memory_space<vmem>>, vector<1x32x512xf32>
      %75 = vector.shape_cast %74 : vector<1x32x512xf32> to vector<32x512xf32>
      %76 = vector.shape_cast %75 : vector<32x512xf32> to vector<1x32x512xf32>
      %cst_49 = arith.constant dense<0.000000e+00> : vector<1xf32>
      %77 = vector.multi_reduction <add>, %76, %cst_49 [1, 2] : vector<1x32x512xf32> to vector<1xf32>
      %78 = vector.shape_cast %77 : vector<1xf32> to vector<1x1x1xf32>
      %79 = vector.extract %78[0, 0, 0] : f32 from vector<1x1x1xf32>
      %80 = vector.broadcast %79 : f32 to vector<8x128xf32>
      %81 = arith.select %73, %80, %71 : vector<8x128xi1>, vector<8x128xf32>
      %c1_i32_50 = arith.constant 1 : i32
      %82 = vector.broadcast %c1_i32_50 : i32 to vector<8x128xi32>
      %83 = arith.cmpi eq, %70, %82 : vector<8x128xi32>
      %c1_51 = arith.constant 1 : index
      %c0_52 = arith.constant 0 : index
      %c0_53 = arith.constant 0 : index
      %84 = vector.load %arg6[%c1_51, %c0_52, %c0_53] : memref<6x32x512xf32, #tpu.memory_space<vmem>>, vector<1x32x512xf32>
      %85 = vector.shape_cast %84 : vector<1x32x512xf32> to vector<32x512xf32>
      %86 = vector.shape_cast %85 : vector<32x512xf32> to vector<1x32x512xf32>
      %cst_54 = arith.constant dense<0.000000e+00> : vector<1xf32>
      %87 = vector.multi_reduction <add>, %86, %cst_54 [1, 2] : vector<1x32x512xf32> to vector<1xf32>
      %88 = vector.shape_cast %87 : vector<1xf32> to vector<1x1x1xf32>
      %89 = vector.extract %88[0, 0, 0] : f32 from vector<1x1x1xf32>
      %90 = vector.broadcast %89 : f32 to vector<8x128xf32>
      %91 = arith.select %83, %90, %81 : vector<8x128xi1>, vector<8x128xf32>
      %c2_i32_55 = arith.constant 2 : i32
      %92 = vector.broadcast %c2_i32_55 : i32 to vector<8x128xi32>
      %93 = arith.cmpi eq, %70, %92 : vector<8x128xi32>
      %c2_56 = arith.constant 2 : index
      %c0_57 = arith.constant 0 : index
      %c0_58 = arith.constant 0 : index
      %94 = vector.load %arg6[%c2_56, %c0_57, %c0_58] : memref<6x32x512xf32, #tpu.memory_space<vmem>>, vector<1x32x512xf32>
      %95 = vector.shape_cast %94 : vector<1x32x512xf32> to vector<32x512xf32>
      %96 = vector.shape_cast %95 : vector<32x512xf32> to vector<1x32x512xf32>
      %cst_59 = arith.constant dense<0.000000e+00> : vector<1xf32>
      %97 = vector.multi_reduction <add>, %96, %cst_59 [1, 2] : vector<1x32x512xf32> to vector<1xf32>
      %98 = vector.shape_cast %97 : vector<1xf32> to vector<1x1x1xf32>
      %99 = vector.extract %98[0, 0, 0] : f32 from vector<1x1x1xf32>
      %100 = vector.broadcast %99 : f32 to vector<8x128xf32>
      %101 = arith.select %93, %100, %91 : vector<8x128xi1>, vector<8x128xf32>
      %c3_i32 = arith.constant 3 : i32
      %102 = vector.broadcast %c3_i32 : i32 to vector<8x128xi32>
      %103 = arith.cmpi eq, %70, %102 : vector<8x128xi32>
      %c3_60 = arith.constant 3 : index
      %c0_61 = arith.constant 0 : index
      %c0_62 = arith.constant 0 : index
      %104 = vector.load %arg6[%c3_60, %c0_61, %c0_62] : memref<6x32x512xf32, #tpu.memory_space<vmem>>, vector<1x32x512xf32>
      %105 = vector.shape_cast %104 : vector<1x32x512xf32> to vector<32x512xf32>
      %106 = vector.shape_cast %105 : vector<32x512xf32> to vector<1x32x512xf32>
      %cst_63 = arith.constant dense<0.000000e+00> : vector<1xf32>
      %107 = vector.multi_reduction <add>, %106, %cst_63 [1, 2] : vector<1x32x512xf32> to vector<1xf32>
      %108 = vector.shape_cast %107 : vector<1xf32> to vector<1x1x1xf32>
      %109 = vector.extract %108[0, 0, 0] : f32 from vector<1x1x1xf32>
      %110 = vector.broadcast %109 : f32 to vector<8x128xf32>
      %111 = arith.select %103, %110, %101 : vector<8x128xi1>, vector<8x128xf32>
      %c4_i32 = arith.constant 4 : i32
      %112 = vector.broadcast %c4_i32 : i32 to vector<8x128xi32>
      %113 = arith.cmpi eq, %70, %112 : vector<8x128xi32>
      %c4_64 = arith.constant 4 : index
      %c0_65 = arith.constant 0 : index
      %c0_66 = arith.constant 0 : index
      %114 = vector.load %arg6[%c4_64, %c0_65, %c0_66] : memref<6x32x512xf32, #tpu.memory_space<vmem>>, vector<1x32x512xf32>
      %115 = vector.shape_cast %114 : vector<1x32x512xf32> to vector<32x512xf32>
      %116 = vector.shape_cast %115 : vector<32x512xf32> to vector<1x32x512xf32>
      %cst_67 = arith.constant dense<0.000000e+00> : vector<1xf32>
      %117 = vector.multi_reduction <add>, %116, %cst_67 [1, 2] : vector<1x32x512xf32> to vector<1xf32>
      %118 = vector.shape_cast %117 : vector<1xf32> to vector<1x1x1xf32>
      %119 = vector.extract %118[0, 0, 0] : f32 from vector<1x1x1xf32>
      %120 = vector.broadcast %119 : f32 to vector<8x128xf32>
      %121 = arith.select %113, %120, %111 : vector<8x128xi1>, vector<8x128xf32>
      %c5_i32 = arith.constant 5 : i32
      %122 = vector.broadcast %c5_i32 : i32 to vector<8x128xi32>
      %123 = arith.cmpi eq, %70, %122 : vector<8x128xi32>
      %c5_68 = arith.constant 5 : index
      %c0_69 = arith.constant 0 : index
      %c0_70 = arith.constant 0 : index
      %124 = vector.load %arg6[%c5_68, %c0_69, %c0_70] : memref<6x32x512xf32, #tpu.memory_space<vmem>>, vector<1x32x512xf32>
      %125 = vector.shape_cast %124 : vector<1x32x512xf32> to vector<32x512xf32>
      %126 = vector.shape_cast %125 : vector<32x512xf32> to vector<1x32x512xf32>
      %cst_71 = arith.constant dense<0.000000e+00> : vector<1xf32>
      %127 = vector.multi_reduction <add>, %126, %cst_71 [1, 2] : vector<1x32x512xf32> to vector<1xf32>
      %128 = vector.shape_cast %127 : vector<1xf32> to vector<1x1x1xf32>
      %129 = vector.extract %128[0, 0, 0] : f32 from vector<1x1x1xf32>
      %130 = vector.broadcast %129 : f32 to vector<8x128xf32>
      %131 = arith.select %123, %130, %121 : vector<8x128xi1>, vector<8x128xf32>
      %c0_72 = arith.constant 0 : index
      %c0_73 = arith.constant 0 : index
      %c0_74 = arith.constant 0 : index
      %132 = vector.load %arg5[%c0_72, %c0_73, %c0_74] : memref<1x8x128xf32, #tpu.memory_space<vmem>>, vector<1x8x128xf32>
      %133 = vector.shape_cast %132 : vector<1x8x128xf32> to vector<8x128xf32>
      %134 = vector.shape_cast %131 : vector<8x128xf32> to vector<1x8x128xf32>
      tpu.vector_store %arg5[%c0_72, %c0_73, %c0_74], %134 {strides = array<i32>} : memref<1x8x128xf32, #tpu.memory_space<vmem>>, vector<1x8x128xf32>,
    } else {
    }
    return
  }
  func.func @transform_0(%arg0: i32, %arg1: i32) -> (i32, i32) {
    %c1_i32 = arith.constant 1 : i32
    %0 = arith.muli %arg0, %c1_i32 : i32
    %1 = arith.addi %0, %arg1 : i32
    %c0_i32 = arith.constant 0 : i32
    %c0_i32_0 = arith.constant 0 : i32
    return %1, %c0_i32 : i32, i32
  }
  func.func @transform_1(%arg0: i32, %arg1: i32) -> (i32, i32) {
    %c1_i32 = arith.constant 1 : i32
    %0 = arith.muli %arg0, %c1_i32 : i32
    %1 = arith.addi %0, %arg1 : i32
    %c0_i32 = arith.constant 0 : i32
    %c0_i32_0 = arith.constant 0 : i32
    return %1, %c0_i32 : i32, i32
  }
  func.func @transform_2(%arg0: i32, %arg1: i32) -> (i32, i32) {
    %c1_i32 = arith.constant 1 : i32
    %0 = arith.muli %arg0, %c1_i32 : i32
    %1 = arith.addi %0, %arg1 : i32
    %c0_i32 = arith.constant 0 : i32
    %c0_i32_0 = arith.constant 0 : i32
    return %1, %c0_i32 : i32, i32
  }
  func.func @transform_3(%arg0: i32, %arg1: i32) -> (i32, i32, i32) {
    %c0_i32 = arith.constant 0 : i32
    %c0_i32_0 = arith.constant 0 : i32
    %c0_i32_1 = arith.constant 0 : i32
    return %arg0, %c0_i32, %c0_i32_0 : i32, i32, i32
  }
}

</mosaic_0001>

<bundles_post_ra>
// kernel: tpu_custom_call.1
= control target key start
LH: loop header
LB: loop body
LE: loop exit
PB: predicated region body
PF: predicated region fallthrough
CT: control target
= control target key end

     0   :  { %s2984_s0 = inlined_call_operand.hbm [shape: f32[64,512], index: 0, kind: input, shape index: {}]   ;;  %s2985_s1 = inlined_call_operand.hbm [shape: f32[64,512], index: 1, kind: input, shape index: {}]   ;;  %s2986_s2 = inlined_call_operand.hbm [shape: s8[64,512], index: 2, kind: input, shape index: {}]   ;;  %s2987_s3 = inlined_call_operand.hbm [shape: f32[2,8,128], index: 3, kind: output, shape index: {}]  }
   0x1   :  { %3041 = sst [smem:[#allocation23_spill]] %s2984_s0 }
   0x2   :  { %3042 = sst [smem:[#allocation24_spill]] %s2985_s1 }
   0x3   :  { %8 = vsyncpa [#allocation4], 0 }
   0x4   :  { %10 = vsyncpa [#allocation4 + $0x1], 0 }
   0x5   :  { %11 = vsyncpa [#allocation7], 0 }
   0x6   :  { %13 = vsyncpa [#allocation7 + $0x1], 0 }
   0x7   :  { %14 = vsyncpa [#allocation5], 0 }
   0x8   :  { %16 = vsyncpa [#allocation5 + $0x1], 0  ;;  %s1924_s12 = smov 0   ;;  %s1926_s13 = smov 0  }
   0x9   :  { %s1928_s14 = smov 0   ;;  %s1930_s15 = smov 0  }
   0xa   :  { %s1932_s16 = smov 0   ;;  %s1934_s17 = smov 0  }
   0xb LB: > { %3043 = sst [smem:[#allocation13_spill]] %s1883_s14  ;;  %s1955_s18 = sadd.s32 4294967295, %s1895_s17   ;;  %s1895_s17 = sphi %s1934_s17, %s22_s17   ;;  %s1891_s16 = sphi %s1932_s16, %s3157_s16   ;;  %s1887_s15 = sphi %s1930_s15, %s3156_s15   ;;  %s1883_s14 = sphi %s1928_s14, %s3152_s14   ;;  %s1879_s13 = sphi %s1926_s13, %s3155_s13   ;;  %s1875_s12 = sphi %s1924_s12, %s3154_s12  }
   0xc   : > { %3044 = sst [smem:[#allocation14_spill]] %s1895_s17  ;;  %s1540_s19 = sadd.s32 4294967294, %s1895_s17  }
   0xd   : > { %s34_s20 = sadd.s32 1, %s1891_s16  ;;  %s43_s21 = sadd.s32 1, %s1883_s14 }
   0xe   : > { %p36_p0 = scmp.ge.s32.totalorder %s34_s20, 2  ;;  %p50_p1 = scmp.ne.s32.totalorder %s1883_s14, %s1879_s13 }
   0xf   : > { %p51_p2 = scmp.eq.s32.totalorder %s1895_s17, 0  ;;  %p56_p3 = scmp.ne.s32.totalorder %s1879_s13, %s1875_s12 }
  0x10   : > { %s3159_s20 = smov (%p36_p0, %s34_s20), 0  ;;  %p57_p5 = scmp.eq.s32.totalorder %s1955_s18, 0 }
  0x11   : > { %3045 = sst [smem:[#allocation15_spill]] %s3159_s20  ;;  %p1967_p4 = por %p51_p2, %p50_p1 }
  0x12   : > { %s40_s23 = ssub.s32 %s1891_s16, %s3159_s20  ;;  %p136_p6 = scmp.eq.s32.totalorder %s1955_s18, 1 }
  0x13   : > { %p41_p7 = scmp.eq.s32.totalorder %s40_s23, 0  ;;  %p1975_p8 = por %p57_p5, %p56_p3 }
  0x14   : > { %p1979_p9 = por %p136_p6, %p50_p1  ;;  %p142_p10 = scmp.eq.s32.totalorder %s1540_s19, 1 }
  0x15   : > { %s3047_s24 = scalar_select %p1975_p8, 1, 0 }
  0x16   : > { %s3048_s25 = scalar_select %p1979_p9, 1, 0 }
  0x17   : > { %s1984_s26 = scalar_select %p41_p7, %s1883_s14, %s43_s21  }
  0x18   : > { %p1986_p11 = por %p142_p10, %p56_p3  ;;  %p1602_p13 = scmp.lt.s32.totalorder %s1895_s17, 2 }
  0x19   : > { %3049 = sst [smem:[#allocation16_spill]] %s1984_s26  ;;  %s1993_s28 = sand.u32 1, %s1883_s14  }
  0x1a   : > { %s3050_s27 = scalar_select %p1986_p11, 1, 0 }
  0x1b   : > { %s1543_s29 = sshll.u32 %s1993_s28, 7  ;;  %s1564_s30 = sshll.u32 %s1891_s16, 11 }
  0x1c   : > { %3051 = sst [smem:[#allocation17_spill]] %s3050_s27  ;;  %p1999_p0 = pnand %p1602_p13, %p1967_p4 }
  0x1d   : > { %s185_s5 = sand.u32 1, %s1895_s17   ;;  %s3053_s1 = sld [smem:[#allocation24_spill]] }
  0x1e   : > { %s3052_s4 = scalar_select %p1999_p0, 1, 0 }
  0x1f   : > { %s189_s9 = scalar_lea.vmem [#allocation6], %s1543_s29  ;;  %s2017_s11 = scalar_lea.sflag [#allocation7], %s185_s5 }
  0x20   : > { %s198_s10 = sshll.u32 %s189_s9, 4  ;;  %p2023_p4 = pneg %p1999_p0  ;;  %s2014_s10 = int_to_ptr.vmem [resolvable:$true] %s198_s10 }
  0x23   : > { %s2009_s8 = scalar_lea.hbm %s3053_s1, %s1564_s30  ;;  %s1724_s6 = scalar_lea.hbm %s3053_s1, 4096 }
  0x24   : > { %s1719_s19 = scalar_lea.hbm %s2009_s8, 2048  ;;  %p1725_p7 = scmp.lt.u32.totalorder %s2009_s8, %s3053_s1 }
  0x25   : > { %p1720_p3 = scmp.ne.s32.totalorder %s2009_s8, %s1719_s19  ;;  %p1726_p10 = scmp.lt.u32.totalorder %s1724_s6, %s1719_s19 }
  0x26   : > { %p1728_p12 = scmp.lt.u32.totalorder %s1719_s19, %s2009_s8 }
  0x27   : > { %p1722_p5 = pnand %p2023_p4, %p1720_p3  ;;  %p1727_p13 = por %p1726_p10, %p1725_p7 }
  0x29   : > { %p1723_p6 = pneg %p1722_p5  ;;  %p1729_p1 = por %p1728_p12, %p1727_p13 }
  0x2b   : > { %p1730_p2 = pnand %p1729_p1, %p1723_p6 }
  0x2d   : > { %1733 = shalt.err (!%p1730_p2)
}
  0x2e   : > { %s1734_s5 = scalar_lea.vmem %s2014_s10, 2048  ;;  %s1897_s22 = smov [#allocation6]  }
  0x2f   : > { %p1735_p3 = scmp.ne.s32.totalorder %s2014_s10, %s1734_s5  ;;  %s1739_s23 = sshll.u32 %s1897_s22, 4  ;;  %s1740_s23 = int_to_ptr.vmem [resolvable:$false] %s1739_s23 }
  0x30   : > { %s1741_s7 = scalar_lea.vmem %s1740_s23, 4096  ;;  %p1742_p9 = scmp.lt.s32.totalorder %s2014_s10, %s1740_s23 }
  0x31   : > { %p1737_p5 = pnand %p1735_p3, %p2023_p4  ;;  %p1743_p8 = scmp.lt.s32.totalorder %s1741_s7, %s1734_s5 }
  0x33   : > { %p1738_p11 = pneg %p1737_p5  ;;  %p1744_p7 = por %p1743_p8, %p1742_p9 }
  0x35   : > { %p1745_p10 = pnand %p1744_p7, %p1738_p11 }
  0x37   : > { %1748 = shalt.err (!%p1745_p10)
}
  0x38   : > { %s2990_s19 = smov 512   ;;  %s2991_s6 = smov 32  }
  0x39   : > { %1594 = dma.hbm_to_vmem [thread:$0]  (!%p1999_p0), %s2009_s8, 2048, %s2014_s10, %s2017_s11, %s2990_s19, %s2990_s19, %s2991_s6  }
  0x3a   : > { %p3055_p8 = scmp.lt.s32.totalorder %s1895_s17, 3  ;;  %p3056_p9 = scmp.ge.s32.totalorder %s1895_s17, 1 }
  0x3b   : > { %s3058_s0 = sld [smem:[#allocation23_spill]]  ;;  %s166_s7 = scalar_lea.vmem [#allocation3], %s1543_s29 }
  0x3c   : > { %p2054_p11 = pnand %p3056_p9, %p3055_p8  ;;  %s175_s1 = sshll.u32 %s166_s7, 4  ;;  %s2068_s1 = int_to_ptr.vmem [resolvable:$true] %s175_s1 }
  0x3d   : > { %s1551_s8 = sshll.u32 %s1993_s28, 5  ;;  %s163_s10 = scalar_lea.sflag [#allocation4], %s1993_s28 }
  0x3e   : > { %s3057_s9 = scalar_select %p2054_p11, 1, 0 }
  0x41   : > { %s2063_s23 = scalar_lea.hbm %s3058_s0, %s1564_s30  ;;  %s1754_s30 = scalar_lea.hbm %s3058_s0, 4096 }
  0x42   : > { %s1749_s19 = scalar_lea.hbm %s2063_s23, 2048  ;;  %p1755_p6 = scmp.lt.u32.totalorder %s2063_s23, %s3058_s0 }
  0x43   : > { %p1750_p12 = scmp.ne.s32.totalorder %s2063_s23, %s1749_s19  ;;  %p1756_p13 = scmp.lt.u32.totalorder %s1754_s30, %s1749_s19 }
  0x44   : > { %p1758_p5 = scmp.lt.u32.totalorder %s1749_s19, %s2063_s23 }
  0x45   : > { %p1752_p1 = pnand %p1750_p12, %p2023_p4  ;;  %p1757_p3 = por %p1756_p13, %p1755_p6 }
  0x47   : > { %p1753_p2 = pneg %p1752_p1  ;;  %p1759_p7 = por %p1758_p5, %p1757_p3 }
  0x49   : > { %p1760_p10 = pnand %p1759_p7, %p1753_p2 }
  0x4b   : > { %1763 = shalt.err (!%p1760_p10)
}
  0x4c   : > { %s1764_s29 = scalar_lea.vmem %s2068_s1, 2048  ;;  %s1900_s6 = smov [#allocation3]  }
  0x4d   : > { %p1765_p8 = scmp.ne.s32.totalorder %s2068_s1, %s1764_s29  ;;  %s1769_s7 = sshll.u32 %s1900_s6, 4  ;;  %s1770_s7 = int_to_ptr.vmem [resolvable:$false] %s1769_s7 }
  0x4e   : > { %s1771_s20 = scalar_lea.vmem %s1770_s7, 4096  ;;  %p1772_p1 = scmp.lt.s32.totalorder %s2068_s1, %s1770_s7 }
  0x4f   : > { %p1767_p9 = pnand %p1765_p8, %p2023_p4  ;;  %p1773_p11 = scmp.lt.s32.totalorder %s1771_s20, %s1764_s29 }
  0x51   : > { %p1768_p12 = pneg %p1767_p9  ;;  %p1774_p6 = por %p1773_p11, %p1772_p1 }
  0x53   : > { %p1775_p13 = pnand %p1774_p6, %p1768_p12 }
  0x55   : > { %1778 = shalt.err (!%p1775_p13)
}
  0x56   : > { %s3059_s19 = smov 32   ;;  %s3060_s5 = smov 512  }
  0x57   : > { %1591 = dma.hbm_to_vmem [thread:$0]  (!%p1999_p0), %s2063_s23, 2048, %s2068_s1, %s163_s10, %s3060_s5, %s3060_s5, %s3059_s19  }
  0x58   : > { %s1567_s30 = sshll.u32 %s1891_s16, 9  ;;  %s212_s22 = scalar_lea.vmem [#allocation8], %s1551_s8 }
  0x59   : > { %s221_s29 = sshll.u32 %s212_s22, 4  ;;  %s219_s20 = scalar_lea.hbm %s2986_s2, %s1567_s30  ;;  %s222_s29 = int_to_ptr.vmem [resolvable:$true] %s221_s29 }
  0x5a   : > { %s1779_s0 = scalar_lea.hbm %s219_s20, 512  ;;  %s1784_s17 = scalar_lea.hbm %s2986_s2, 1024 }
  0x5b   : > { %p1780_p11 = scmp.ne.s32.totalorder %s219_s20, %s1779_s0  ;;  %p1785_p5 = scmp.lt.u32.totalorder %s219_s20, %s2986_s2 }
  0x5c   : > { %p1786_p7 = scmp.lt.u32.totalorder %s1784_s17, %s1779_s0  ;;  %p1788_p8 = scmp.lt.u32.totalorder %s1779_s0, %s219_s20 }
  0x5d   : > { %p1782_p2 = pnand %p1780_p11, %p2023_p4 }
  0x5e   : > { %p1787_p10 = por %p1786_p7, %p1785_p5 }
  0x5f   : > { %p1783_p3 = pneg %p1782_p2 }
  0x60   : > { %p1789_p9 = por %p1788_p8, %p1787_p10 }
  0x62   : > { %p1790_p12 = pnand %p1789_p9, %p1783_p3 }
  0x64   : > { %1793 = shalt.err (!%p1790_p12)
}
  0x65   : > { %s1794_s28 = scalar_lea.vmem %s222_s29, 512  ;;  %s1901_s23 = smov [#allocation8]  }
  0x66   : > { %p1795_p1 = scmp.ne.s32.totalorder %s222_s29, %s1794_s28  ;;  %s1799_s8 = sshll.u32 %s1901_s23, 4  ;;  %s1800_s8 = int_to_ptr.vmem [resolvable:$false] %s1799_s8 }
  0x67   : > { %s1801_s14 = scalar_lea.vmem %s1800_s8, 1024  ;;  %p1802_p11 = scmp.lt.s32.totalorder %s222_s29, %s1800_s8 }
  0x68   : > { %p1797_p6 = pnand %p1795_p1, %p2023_p4  ;;  %p1803_p2 = scmp.lt.s32.totalorder %s1801_s14, %s1794_s28 }
  0x6a   : > { %p1798_p13 = pneg %p1797_p6  ;;  %p1804_p0 = por %p1803_p2, %p1802_p11 }
  0x6c   : > { %p1805_p5 = pnand %p1804_p0, %p1798_p13 }
  0x6e   : > { %1808 = shalt.err (!%p1805_p5)
}
  0x6f   : > { %p3061_p7 = scmp.ne.s32.totalorder %s3052_s4, 0  ;;  %p3062_p3 = scmp.ne.s32.totalorder %s3057_s9, 0 }
  0x71   : > { %1597 = dma.hbm_to_vmem [thread:$0]  (!%p3061_p7), %s219_s20, 512, %s222_s29, %s2017_s11  }
  0x72   : > { %230 = sbr.rel (%p3062_p3) target bundleno = 495 (0x1ef), region = 32 }
  0x79   : > { %s2119_s0 = sand.u32 1, %s1879_s13   ;;  %p3063_p4 = scmp.ne.s32.totalorder %s3047_s24, 0 }
  0x7a   : > { %s1555_s17 = sshll.u32 %s2119_s0, 7  ;;  %s233_s26 = scalar_lea.sflag [#allocation4], %s2119_s0 }
  0x7b   : > { %s2123_s27 = scalar_lea.vmem [#allocation3], %s1555_s17 }
  0x7c   : > { %1862 = dma.done.wait (%p3063_p4), %s233_s26, 2048  }
  0x7d   : > { %1864 = vsyncadd (%p3063_p4), %s233_s26, 4294965248  ;;  %s241_s4 = sand.u32 1, %s1955_s18   ;;  %s2130_s21 = scalar_lea.vmem [#allocation6], %s1555_s17 }
  0x7e   : > { %s242_s11 = scalar_lea.sflag [#allocation7], %s241_s4 }
  0x7f   : > { %1866 = dma.done.wait (%p3063_p4), %s242_s11, 2560  }
  0x80   : > { %1868 = vsyncadd (%p3063_p4), %s242_s11, 4294964736  ;;  %s1557_s9 = sshll.u32 %s2119_s0, 5  ;;  %v3029_v19 = vmov 0.0   ;;  %v392_v22 = vld [vmem:[%s2130_s21] sm:$0xff]  ;;  %v393_v26 = vld [vmem:[%s2130_s21 + $0x8] sm:$0xff]  ;;  %s1558_s24 = sshll.u32 %s2119_s0, 3 }
  0x81   : > { %s254_s10 = scalar_lea.vmem [#allocation8], %s1557_s9  ;;  %v394_v27 = vld [vmem:[%s2130_s21 + $0x10] sm:$0xff]  ;;  %v395_v30 = vld [vmem:[%s2130_s21 + $0x18] sm:$0xff]  ;;  %v396_v31 = vld [vmem:[%s2130_s21 + $0x20] sm:$0xff]  ;;  %v408_v38 = vsub.f32 0.0, %v392_v22  ;;  %v409_v39 = vsub.f32 0.0, %v393_v26 }
  0x82   : > { %v680_v0 = vld [vmem:[%s254_s10] sm:$0xff]  ;;  %v681_v1 = vld [vmem:[%s254_s10 + $0x8] sm:$0xff]  ;;  %v682_v2 = vld [vmem:[%s254_s10 + $0x10] sm:$0xff]  ;;  %v410_v40 = vsub.f32 0.0, %v394_v27  ;;  %v411_v45 = vsub.f32 0.0, %v395_v30  ;;  %v412_v46 = vsub.f32 0.0, %v396_v31 }
  0x83   : > { %v2137_v3 = vld [vmem:[%s254_s10 + $0x18] sm:$0xff]  ;;  %v2139_v4 = vunpack.c.0.s8 %v680_v0  ;;  %v2141_v5 = vunpack.c.0.s8 %v681_v1  ;;  %v2143_v6 = vunpack.c.0.s8 %v682_v2  ;;  %v2148_v8 = vunpack.c.1.s8 %v680_v0  ;;  %v424_v34 = vld [vmem:[%s2123_s27] sm:$0xff]  ;;  %v425_v35 = vld [vmem:[%s2123_s27 + $0x8] sm:$0xff]  ;;  %s1560_s22 = sshll.u32 %s1887_s15, 7  ;;  %s286_s29 = scalar_lea.vmem [#allocation9], %s1558_s24 }
  0x84   : > { %v2146_v7 = vunpack.c.0.s8 %v2137_v3  ;;  %v2150_v9 = vunpack.c.1.s8 %v681_v1  ;;  %v2152_v10 = vunpack.c.1.s8 %v682_v2  ;;  %v2155_v11 = vunpack.c.1.s8 %v2137_v3  ;;  %v426_v36 = vld [vmem:[%s2123_s27 + $0x10] sm:$0xff]  ;;  %v427_v41 = vld [vmem:[%s2123_s27 + $0x18] sm:$0xff]  ;;  %v428_v42 = vld [vmem:[%s2123_s27 + $0x20] sm:$0xff]  ;;  %s1415_s6 = sshll.u32 %s286_s29, 4  ;;  %s2935_s23 = scalar_lea.hbm %s2987_s3, %s1560_s22  ;;  %s2937_s6 = int_to_ptr.vmem [resolvable:$true] %s1415_s6 }
  0x85   : > { %v2157_v12 = vunpack.c.2.s8 %v680_v0  ;;  %v2159_v13 = vunpack.c.2.s8 %v681_v1  ;;  %vm700_vm0 = vcmp.eq.s32.totalorder %v2139_v4, 0  ;;  %v2162_v14 = vunpack.c.2.s8 %v682_v2  ;;  %s1402_s15 = scalar_lea.sflag [#allocation5], %s2119_s0  ;;  %s1809_s8 = scalar_lea.vmem %s2937_s6, 128 }
  0x86   : > { %v2165_v15 = vunpack.c.2.s8 %v2137_v3  ;;  %v2167_v16 = vunpack.c.3.s8 %v680_v0  ;;  %vm701_vm1 = vcmp.eq.s32.totalorder %v2141_v5, 0  ;;  %v2170_v17 = vunpack.c.3.s8 %v681_v1  ;;  %p1810_p0 = scmp.ne.s32.totalorder %s2937_s6, %s1809_s8  ;;  %p3146_p10 = scmp.ne.s32.totalorder %s3048_s25, 0 }
  0x87   : > { %vm702_vm2 = vcmp.eq.s32.totalorder %v2143_v6, 0  ;;  %vm3016_vm3 = vcmp.eq.s32.totalorder %v2146_v7, 0  ;;  %vm2998_vm4 = vcmp.eq.s32.totalorder %v2148_v8, 0  ;;  %v2175_v18 = vunpack.c.3.s8 %v682_v2  ;;  %s1903_s14 = smov [#allocation9]  }
  0x88   : > { %3064 = vst [vmem:[#allocation18_spill] sm:$0xff] %v2170_v17  ;;  %vm3001_vm5 = vcmp.eq.s32.totalorder %v2150_v9, 0  ;;  %vm3000_vm6 = vcmp.eq.s32.totalorder %v2152_v10, 0  ;;  %v797_v20 = vsel %vm700_vm0, 1.0, %v3029_v19  ;;  %v798_v21 = vsel %vm701_vm1, 1.0, %v3029_v19  ;;  %p1811_p8 = pnand %p1810_p0, %p3146_p10  ;;  %s1813_s17 = sshll.u32 %s1903_s14, 4  ;;  %s1814_s17 = int_to_ptr.vmem [resolvable:$false] %s1813_s17 }
  0x89   : > { %vm991_vm7 = vcmp.eq.s32.totalorder %v2139_v4, 2  ;;  %vm992_vm8 = vcmp.eq.s32.totalorder %v2141_v5, 2  ;;  %vm3017_vm9 = vcmp.eq.s32.totalorder %v2143_v6, 2  ;;  %vm2999_vm10 = vcmp.eq.s32.totalorder %v2155_v11, 0  ;;  %s1815_s26 = scalar_lea.vmem %s1814_s17, 256  ;;  %p1816_p12 = scmp.lt.s32.totalorder %s2937_s6, %s1814_s17 }
  0x8a   : > { %v799_v23 = vsel %vm702_vm2, 1.0, %v3029_v19  ;;  %v800_v24 = vsel %vm3016_vm3, 1.0, %v3029_v19  ;;  %v801_v25 = vsel %vm2998_vm4, 1.0, %v3029_v19  ;;  %vm3003_vm11 = vcmp.eq.s32.totalorder %v2139_v4, 1  ;;  %p1812_p9 = pneg %p1811_p8  ;;  %p1817_p1 = scmp.lt.s32.totalorder %s1815_s26, %s1809_s8 }
  0x8b   : > { %vm3007_vm12 = vcmp.eq.s32.totalorder %v2146_v7, 2  ;;  %v1089_v28 = vsel %vm991_vm7, 1.0, %v3029_v19  ;;  %v1090_v29 = vsel %vm992_vm8, 1.0, %v3029_v19  ;;  %vm3005_vm13 = vcmp.eq.s32.totalorder %v2157_v12, 0 }
  0x8c   : > { %vm3002_vm14 = vcmp.eq.s32.totalorder %v2141_v5, 1  ;;  %vm3004_vm15 = vcmp.eq.s32.totalorder %v2148_v8, 2  ;;  %v1091_v32 = vsel %vm3017_vm9, 1.0, %v3029_v19  ;;  %v1202_v33 = vadd.f32 %v798_v21, %v797_v20  ;;  %p1818_p6 = por %p1817_p1, %p1816_p12 }
  0x8d   : > { %v1374_v37 = vadd.f32 %v1090_v29, %v1089_v28  ;;  %vm3011_vm4 = vcmp.eq.s32.totalorder %v2159_v13, 0  ;;  %v1092_v43 = vsel %vm3007_vm12, 1.0, %v3029_v19  ;;  %v2226_v48 = vmul.f32 %v424_v34, %v408_v38 }
  0x8e   : > { %v1203_v44 = vadd.f32 %v1202_v33, %v799_v23  ;;  %v2228_v49 = vmul.f32 %v425_v35, %v409_v39  ;;  %v2230_v50 = vmul.f32 %v426_v36, %v410_v40  ;;  %v1093_v51 = vsel %vm3004_vm15, 1.0, %v3029_v19  ;;  %p1819_p13 = pnand %p1818_p6, %p1812_p9 }
  0x8f   : > { %v1375_v47 = vadd.f32 %v1374_v37, %v1091_v32  ;;  %v2235_v53 = vmul.f32 %v427_v41, %v411_v45  ;;  %v2237_v54 = vmul.f32 %v428_v42, %v412_v46  ;;  %v802_v55 = vsel %vm3001_vm5, 1.0, %v3029_v19 }
  0x90   : > { %v1204_v52 = vadd.f32 %v1203_v44, %v800_v24  ;;  %v803_v56 = vsel %vm3000_vm6, 1.0, %v3029_v19  ;;  %v804_v57 = vsel %vm2999_vm10, 1.0, %v3029_v19  ;;  %v943_v59 = vsel %vm3003_vm11, 1.0, %v3029_v19 }
  0x91   : > { %v1376_v58 = vadd.f32 %v1375_v47, %v1092_v43  ;;  %v944_v60 = vsel %vm3002_vm14, 1.0, %v3029_v19  ;;  %v472_v62 = vmin.f32 %v2226_v48, 50.0  ;;  %v473_v0 = vmin.f32 %v2228_v49, 50.0 }
  0x92   : > { %v1205_v61 = vadd.f32 %v1204_v52, %v801_v25  ;;  %v474_v1 = vmin.f32 %v2230_v50, 50.0  ;;  %v475_v2 = vmin.f32 %v2235_v53, 50.0  ;;  %vm3006_vm10 = vcmp.eq.s32.totalorder %v2143_v6, 1 }
  0x93   : > { %v2255_v63 = vadd.f32 %v1376_v58, %v1093_v51  ;;  %v476_v21 = vmin.f32 %v2237_v54, 50.0  ;;  %v488_v22 = vmul.f32 1.442695, %v472_v62  ;;  %v2263_v23 = vunpack.c.3.s8 %v2137_v3 }
  0x94   : > { %v1206_v20 = vadd.f32 %v1205_v61, %v802_v55  ;;  %v490_v24 = vmul.f32 1.442695, %v473_v0  ;;  %v492_v25 = vmul.f32 1.442695, %v474_v1  ;;  %v494_v26 = vmul.f32 1.442695, %v475_v2 }
  0x95   : > { %v1288_v28 = vadd.f32 %v944_v60, %v943_v59  ;;  %1655 = vpow2.f32 %v488_v22  ;;  %v496_v29 = vmul.f32 1.442695, %v476_v21  ;;  %vm3009_vm6 = vcmp.eq.s32.totalorder %v2162_v14, 0 }
  0x96   : > { %v1207_v27 = vadd.f32 %v1206_v20, %v803_v56  ;;  %v805_v30 = vsel %vm3005_vm13, 1.0, %v3029_v19  ;;  %v945_v31 = vsel %vm3006_vm10, 1.0, %v3029_v19  ;;  %1657 = vpow2.f32 %v490_v24 }
  0x97   : > { %vm3008_vm5 = vcmp.eq.s32.totalorder %v2165_v15, 0  ;;  %vm3015_vm14 = vcmp.eq.s32.totalorder %v2146_v7, 1  ;;  %1659 = vpow2.f32 %v492_v25  ;;  %vm3010_vm11 = vcmp.eq.s32.totalorder %v2167_v16, 0 }
  0x98   : > { %v1208_v3 = vadd.f32 %v1207_v27, %v804_v57  ;;  %vm3014_vm15 = vcmp.eq.s32.totalorder %v2170_v17, 0  ;;  %v806_v32 = vsel %vm3011_vm4, 1.0, %v3029_v19  ;;  %1661 = vpow2.f32 %v494_v26 }
  0x99   : > { %vm3012_vm13 = vcmp.eq.s32.totalorder %v2175_v18, 0  ;;  %v1289_v34 = vadd.f32 %v1288_v28, %v945_v31  ;;  %1663 = vpow2.f32 %v496_v29  ;;  %vm3013_vm10 = vcmp.eq.s32.totalorder %v2263_v23, 0 }
  0x9a   : > { %v1209_v33 = vadd.f32 %v1208_v3, %v805_v30  ;;  %v807_v35 = vsel %vm3009_vm6, 1.0, %v3029_v19  ;;  %v946_v36 = vsel %vm3015_vm14, 1.0, %v3029_v19  ;;  %vm3018_vm12 = vcmp.eq.s32.totalorder %v2148_v8, 1 }
  0x9b   : > { %v808_v38 = vsel %vm3008_vm5, 1.0, %v3029_v19  ;;  %v809_v39 = vsel %vm3010_vm11, 1.0, %v3029_v19  ;;  %v810_v40 = vsel %vm3014_vm15, 1.0, %v3029_v19  ;;  %v811_v41 = vsel %vm3012_vm13, 1.0, %v3029_v19 }
  0x9c   : > { %v1210_v37 = vadd.f32 %v1209_v33, %v806_v32  ;;  %v812_v42 = vsel %vm3013_vm10, 1.0, %v3029_v19  ;;  %v1290_v44 = vadd.f32 %v1289_v34, %v946_v36  ;;  %vm850_vm5 = vcmp.eq.s32.totalorder %v2150_v9, 1 }
  0x9d   : > { %vm3019_vm6 = vcmp.eq.s32.totalorder %v2152_v10, 1  ;;  %vm3020_vm11 = vcmp.eq.s32.totalorder %v2155_v11, 1  ;;  %vm853_vm4 = vcmp.eq.s32.totalorder %v2157_v12, 1  ;;  %v947_v45 = vsel %vm3018_vm12, 1.0, %v3029_v19 }
  0x9e   : > { %v1211_v43 = vadd.f32 %v1210_v37, %v807_v35  ;;  %vm3021_vm13 = vcmp.eq.s32.totalorder %v2159_v13, 1  ;;  %vm3027_vm10 = vcmp.eq.s32.totalorder %v2162_v14, 1  ;;  %vm3024_vm15 = vcmp.eq.s32.totalorder %v2165_v15, 1  ;;  %v2376_v35 = vld [vmem:[%s2130_s21 + $0x28] sm:$0xff] }
  0x9f   : > { %v2310_v46 = vpop.eup %1655  ;;  %vm3023_vm14 = vcmp.eq.s32.totalorder %v2167_v16, 1  ;;  %vm3022_vm3 = vcmp.eq.s32.totalorder %v2170_v17, 1  ;;  %vm3026_vm9 = vcmp.eq.s32.totalorder %v2175_v18, 1  ;;  %vm3025_vm12 = vcmp.eq.s32.totalorder %v2263_v23, 1 }
  0xa0   : > { %v1212_v47 = vadd.f32 %v1211_v43, %v808_v38  ;;  %v2315_v51 = vpop.eup %1657  ;;  %v520_v52 = vadd.f32 1.0, %v2310_v46  ;;  %v1291_v58 = vadd.f32 %v1290_v44, %v947_v45  ;;  %v948_v61 = vsel %vm850_vm5, 1.0, %v3029_v19 }
  0xa1   : > { %v2321_v55 = vpop.eup %1659  ;;  %v529_v57 = vadd.f32 1.0, %v2315_v51  ;;  %v949_v62 = vsel %vm3019_vm6, 1.0, %v3029_v19  ;;  %v523_v2 = vmul.f32 -0.5, %v2310_v46  ;;  %v950_v20 = vsel %vm3020_vm11, 1.0, %v3029_v19 }
  0xa2   : > { %v1213_v56 = vadd.f32 %v1212_v47, %v809_v39  ;;  %v2325_v59 = vpop.eup %1661  ;;  %1665 = vlog2.f32 %v520_v52  ;;  %v538_v60 = vadd.f32 1.0, %v2321_v55  ;;  %v532_v21 = vmul.f32 -0.5, %v2315_v51  ;;  %v2381_v39 = vld [vmem:[%s2130_s21 + $0x30] sm:$0xff] }
  0xa3   : > { %v2334_v0 = vpop.eup %1663  ;;  %1667 = vlog2.f32 %v529_v57  ;;  %v951_v22 = vsel %vm853_vm4, 1.0, %v3029_v19  ;;  %v2347_v24 = vsel %vm3021_vm13, 1.0, %v3029_v19  ;;  %vm456_vm6 = vcmp.gt.f32.partialorder %v2226_v48, 50.0 }
  0xa4   : > { %v1214_v1 = vadd.f32 %v1213_v56, %v810_v40  ;;  %1669 = vlog2.f32 %v538_v60  ;;  %v541_v26 = vmul.f32 -0.5, %v2321_v55  ;;  %v547_v27 = vadd.f32 1.0, %v2325_v59  ;;  %v2384_v40 = vld [vmem:[%s2130_s21 + $0x38] sm:$0xff] }
  0xa5   : > { %v1292_v28 = vadd.f32 %v1291_v58, %v948_v61  ;;  %vm457_vm11 = vcmp.gt.f32.partialorder %v2228_v49, 50.0  ;;  %v556_v29 = vadd.f32 1.0, %v2334_v0  ;;  %v2357_v30 = vsel %vm3027_vm10, 1.0, %v3029_v19 }
  0xa6   : > { %v1215_v25 = vadd.f32 %v1214_v1, %v811_v41  ;;  %v2362_v31 = vsel %vm3024_vm15, 1.0, %v3029_v19  ;;  %v2367_v3 = vsel %vm3023_vm14, 1.0, %v3029_v19  ;;  %vm458_vm13 = vcmp.gt.f32.partialorder %v2230_v50, 50.0 }
  0xa7   : > { %v524_v33 = vadd.f32 1.0, %v523_v2  ;;  %1671 = vlog2.f32 %v547_v27  ;;  %v2373_v34 = vsel %vm3022_vm3, 1.0, %v3029_v19  ;;  %v526_v36 = vand.u32 2147483647, %v2310_v46 }
  0xa8   : > { %v1216_v32 = vadd.f32 %v1215_v25, %v812_v42  ;;  %v533_v37 = vadd.f32 1.0, %v532_v21  ;;  %v550_v38 = vmul.f32 -0.5, %v2325_v59  ;;  %1673 = vlog2.f32 %v556_v29 }
  0xa9   : > { %v535_v41 = vand.u32 2147483647, %v2315_v51  ;;  %v542_v42 = vadd.f32 1.0, %v541_v26  ;;  %v559_v43 = vmul.f32 -0.5, %v2334_v0  ;;  %v1293_v44 = vadd.f32 %v1292_v28, %v949_v62  ;;  %v2412_v26 = vld [vmem:[%s2130_s21 + $0x40] sm:$0xff] }
  0xaa   : > { %1217 = vadd.xlane.f32.xlu0 %v1216_v32  ;;  %vm459_vm3 = vcmp.gt.f32.partialorder %v2235_v53, 50.0  ;;  %v544_v45 = vand.u32 2147483647, %v2321_v55  ;;  %v2393_v47 = vsel %vm3026_vm9, 1.0, %v3029_v19  ;;  %v2398_v52 = vsel %vm3025_vm12, 1.0, %v3029_v19 }
  0xab   : > { %v413_v56 = vsub.f32 0.0, %v2376_v35  ;;  %vm460_vm14 = vcmp.gt.f32.partialorder %v2237_v54, 50.0  ;;  %v525_v57 = vmul.f32 %v2310_v46, %v524_v33  ;;  %v1294_v58 = vadd.f32 %v1293_v44, %v950_v20  ;;  %v403_v46 = vld [vmem:[%s2130_s21 + $0x58] sm:$0xff] }
  0xac   : > { %v414_v60 = vsub.f32 0.0, %v2381_v39  ;;  %v415_v61 = vsub.f32 0.0, %v2384_v40  ;;  %v1666_v62 = vpop.eup %1665  ;;  %vm2405_vm15 = vcmp.lt.f32.partialorder %v526_v36, 0.0004427343  ;;  %v534_v2 = vmul.f32 %v2315_v51, %v533_v37  ;;  %v429_v36 = vld [vmem:[%s2123_s27 + $0x28] sm:$0xff] }
  0xad   : > { %v551_v21 = vadd.f32 1.0, %v550_v38  ;;  %v553_v25 = vand.u32 2147483647, %v2325_v59  ;;  %v1668_v27 = vpop.eup %1667  ;;  %v522_v28 = vmul.f32 0.6931472, %v1666_v62  ;;  %v543_v20 = vmul.f32 %v2321_v55, %v542_v42 }
  0xae   : > { %vm2414_vm12 = vcmp.lt.f32.partialorder %v535_v41, 0.0004427343  ;;  %v560_v29 = vadd.f32 1.0, %v559_v43  ;;  %v1670_v32 = vpop.eup %1669  ;;  %v531_v33 = vmul.f32 0.6931472, %v1668_v27  ;;  %v1295_v44 = vadd.f32 %v1294_v58, %v951_v22 }
  0xaf   : > { %vm2419_vm9 = vcmp.lt.f32.partialorder %v544_v45, 0.0004427343  ;;  %v562_v51 = vand.u32 2147483647, %v2334_v0  ;;  %v528_v37 = vsel %vm2405_vm15, %v525_v57, %v522_v28  ;;  %v540_v38 = vmul.f32 0.6931472, %v1670_v32 }
  0xb0   : > { %v416_v41 = vsub.f32 0.0, %v2412_v26  ;;  %v537_v62 = vsel %vm2414_vm12, %v534_v2, %v531_v33  ;;  %v552_v55 = vmul.f32 %v2325_v59, %v551_v21  ;;  %vm2430_vm10 = vcmp.lt.f32.partialorder %v553_v25, 0.0004427343  ;;  %v401_v45 = vld [vmem:[%s2130_s21 + $0x48] sm:$0xff]  ;;  %v402_v28 = vld [vmem:[%s2130_s21 + $0x50] sm:$0xff] }
  0xb1   : > { %v2437_v43 = vsel %vm456_vm6, %v2226_v48, %v528_v37  ;;  %v1672_v22 = vpop.eup %1671  ;;  %v546_v57 = vsel %vm2419_vm9, %v543_v20, %v540_v38  ;;  %v561_v58 = vmul.f32 %v2334_v0, %v560_v29  ;;  %v2446_v59 = vsel %vm457_vm11, %v2228_v49, %v537_v62  ;;  %v431_v62 = vld [vmem:[%s2123_s27 + $0x38] sm:$0xff] }
  0xb2   : > { %v732_v1 = vsel %vm700_vm0, %v2437_v43, 0.0  ;;  %v1674_v48 = vpop.eup %1673  ;;  %v549_v2 = vmul.f32 0.6931472, %v1672_v22  ;;  %vm2451_vm6 = vcmp.lt.f32.partialorder %v562_v51, 0.0004427343  ;;  %v2458_v0 = vsel %vm458_vm13, %v2230_v50, %v546_v57  ;;  %v433_v57 = vld [vmem:[%s2123_s27 + $0x48] sm:$0xff] }
  0xb3   : > { %v733_v49 = vsel %vm701_vm1, %v2446_v59, 0.0  ;;  %v558_v25 = vmul.f32 0.6931472, %v1674_v48  ;;  %v1024_v26 = vsel %vm991_vm7, %v2437_v43, 0.0  ;;  %v1296_v27 = vadd.f32 %v1295_v44, %v2347_v24  ;;  %v430_v24 = vld [vmem:[%s2123_s27 + $0x30] sm:$0xff]  ;;  %v404_v48 = vld [vmem:[%s2130_s21 + $0x60] sm:$0xff] }
  0xb4   : > { %v417_v20 = vsub.f32 0.0, %v401_v45  ;;  %v555_v50 = vsel %vm2430_vm10, %v552_v55, %v549_v2  ;;  %v734_v29 = vsel %vm702_vm2, %v2458_v0, 0.0  ;;  %v1025_v32 = vsel %vm992_vm8, %v2446_v59, 0.0  ;;  %v405_v2 = vld [vmem:[%s2130_s21 + $0x68] sm:$0xff] }
  0xb5   : > { %v1159_v33 = vadd.f32 %v733_v49, %v732_v1  ;;  %v564_v51 = vsel %vm2451_vm6, %v561_v58, %v558_v25  ;;  %v2484_v37 = vsel %vm459_vm3, %v2235_v53, %v555_v50  ;;  %vm3075_vm0 = vcmp.eq.s32.totalorder %v2143_v6, 2  ;;  %v432_v53 = vld [vmem:[%s2123_s27 + $0x40] sm:$0xff] }
  0xb6   : > { %v1026_v38 = vsel %vm3075_vm0, %v2458_v0, 0.0  ;;  %v1331_v44 = vadd.f32 %v1025_v32, %v1024_v26  ;;  %v2493_v55 = vsel %vm460_vm14, %v2237_v54, %v564_v51  ;;  %vm3076_vm1 = vcmp.eq.s32.totalorder %v2146_v7, 0 }
  0xb7   : > { %v735_v42 = vsel %vm3076_vm1, %v2484_v37, 0.0  ;;  %v418_v45 = vsub.f32 0.0, %v402_v28  ;;  %v419_v22 = vsub.f32 0.0, %v403_v46  ;;  %vm3077_vm2 = vcmp.eq.s32.totalorder %v2146_v7, 2  ;;  %v434_v28 = vld [vmem:[%s2123_s27 + $0x50] sm:$0xff] }
  0xb8   : > { %v1027_v58 = vsel %vm3077_vm2, %v2484_v37, 0.0  ;;  %v1160_v1 = vadd.f32 %v1159_v33, %v734_v29  ;;  %v2507_v54 = vmul.f32 %v429_v36, %v413_v56  ;;  %v2511_v21 = vmul.f32 %v430_v24, %v414_v60  ;;  %v435_v60 = vld [vmem:[%s2123_s27 + $0x58] sm:$0xff]  ;;  %v437_v24 = vld [vmem:[%s2123_s27 + $0x68] sm:$0xff] }
  0xb9   : > { %vm3078_vm3 = vcmp.eq.s32.totalorder %v2148_v8, 0  ;;  %v1332_v25 = vadd.f32 %v1331_v44, %v1026_v38  ;;  %v1297_v26 = vadd.f32 %v1296_v27, %v2357_v30  ;;  %v2520_v35 = vmul.f32 %v431_v62, %v415_v61  ;;  %v406_v30 = vld [vmem:[%s2130_s21 + $0x70] sm:$0xff]  ;;  %v407_v27 = vld [vmem:[%s2130_s21 + $0x78] sm:$0xff]  ;;  %v436_v61 = vld [vmem:[%s2123_s27 + $0x60] sm:$0xff] }
  0xba   : > { %v736_v49 = vsel %vm3078_vm3, %v2493_v55, 0.0  ;;  %vm3079_vm7 = vcmp.eq.s32.totalorder %v2148_v8, 2  ;;  %v1161_v56 = vadd.f32 %v1160_v1, %v735_v42  ;;  %v2526_v46 = vmul.f32 %v432_v53, %v416_v41 }
  0xbb   : > { %v1028_v39 = vsel %vm3079_vm7, %v2493_v55, 0.0  ;;  %v2528_v50 = vmul.f32 %v433_v57, %v417_v20  ;;  %v1333_v29 = vadd.f32 %v1332_v25, %v1027_v58  ;;  %v1298_v32 = vadd.f32 %v1297_v26, %v2362_v31 }
  0xbc   : > { %v420_v33 = vsub.f32 0.0, %v404_v48  ;;  %v421_v36 = vsub.f32 0.0, %v405_v2  ;;  %v2533_v40 = vadd.f32 %v1161_v56, %v736_v49  ;;  %v2537_v51 = vmul.f32 %v434_v28, %v418_v45  ;;  %v438_v48 = vld [vmem:[%s2123_s27 + $0x70] sm:$0xff] }
  0xbd   : > { %v477_v38 = vmin.f32 %v2507_v54, 50.0  ;;  %v478_v41 = vmin.f32 %v2511_v21, 50.0  ;;  %v2541_v20 = vadd.f32 %v1333_v29, %v1028_v39  ;;  %v1299_v44 = vadd.f32 %v1298_v32, %v2367_v3 }
  0xbe   : > { %v2544_v31 = vmul.f32 %v435_v60, %v419_v22  ;;  %v479_v62 = vmin.f32 %v2520_v35, 50.0  ;;  %v422_v42 = vsub.f32 0.0, %v406_v30  ;;  %v423_v53 = vsub.f32 0.0, %v407_v27 }
  0xbf   : > { %3080 = vst [vmem:[#allocation19_spill] sm:$0xff] %v2541_v20  ;;  %v480_v57 = vmin.f32 %v2526_v46, 50.0  ;;  %v481_v45 = vmin.f32 %v2528_v50, 50.0  ;;  %vm3081_vm8 = vcmp.eq.s32.totalorder %v2139_v4, 1  ;;  %v1300_v1 = vadd.f32 %v1299_v44, %v2373_v34  ;;  %v439_v34 = vld [vmem:[%s2123_s27 + $0x78] sm:$0xff] }
  0xc0   : > { %v878_v58 = vsel %vm3081_vm8, %v2437_v43, 0.0  ;;  %v2554_v2 = vmul.f32 %v436_v61, %v420_v33  ;;  %v2556_v3 = vmul.f32 %v437_v24, %v421_v36  ;;  %vm3082_vm9 = vcmp.eq.s32.totalorder %v2141_v5, 1 }
  0xc1   : > { %v879_v22 = vsel %vm3082_vm9, %v2446_v59, 0.0  ;;  %v482_v49 = vmin.f32 %v2537_v51, 50.0  ;;  %v498_v25 = vmul.f32 1.442695, %v477_v38  ;;  %v500_v26 = vmul.f32 1.442695, %v478_v41 }
  0xc2   : > { %v1301_v28 = vadd.f32 %v1300_v1, %v2393_v47  ;;  %v483_v4 = vmin.f32 %v2544_v31, 50.0  ;;  %v502_v43 = vmul.f32 1.442695, %v479_v62  ;;  %v504_v39 = vmul.f32 1.442695, %v480_v57 }
  0xc3   : > { %v2565_v56 = vmul.f32 %v438_v48, %v422_v42  ;;  %1675 = vpow2.f32 %v498_v25  ;;  %v506_v60 = vmul.f32 1.442695, %v481_v45  ;;  %v1245_v29 = vadd.f32 %v879_v22, %v878_v58 }
  0xc4   : > { %v1302_v32 = vadd.f32 %v1301_v28, %v2398_v52  ;;  %v484_v5 = vmin.f32 %v2554_v2, 50.0  ;;  %1677 = vpow2.f32 %v500_v26  ;;  %vm3040_vm10 = vcmp.eq.s32.totalorder %v2150_v9, 2 }
  0xc5   : > { %vm3083_vm11 = vcmp.eq.s32.totalorder %v2143_v6, 1  ;;  %1679 = vpow2.f32 %v502_v43  ;;  %v508_v59 = vmul.f32 1.442695, %v482_v49  ;;  %v2573_v30 = vmul.f32 %v439_v34, %v423_v53 }
  0xc6   : > { %v880_v47 = vsel %vm3083_vm11, %v2458_v0, 0.0  ;;  %1303 = vadd.xlane.f32.xlu1 %v1302_v32  ;;  %v485_v27 = vmin.f32 %v2556_v3, 50.0  ;;  %1681 = vpow2.f32 %v504_v39  ;;  %v510_v33 = vmul.f32 1.442695, %v483_v4 }
  0xc7   : > { %vm3039_vm12 = vcmp.eq.s32.totalorder %v2152_v10, 2  ;;  %v486_v52 = vmin.f32 %v2565_v56, 50.0  ;;  %1683 = vpow2.f32 %v506_v60  ;;  %v1246_v36 = vadd.f32 %v1245_v29, %v880_v47 }
  0xc8   : > { %v512_v61 = vmul.f32 1.442695, %v484_v5  ;;  %v1094_v6 = vsel %vm3040_vm10, 1.0, %v3029_v19  ;;  %vm3038_vm13 = vcmp.eq.s32.totalorder %v2155_v11, 2  ;;  %vm3084_vm14 = vcmp.eq.s32.totalorder %v2146_v7, 1 }
  0xc9   : > { %v881_v0 = vsel %vm3084_vm14, %v2484_v37, 0.0  ;;  %1685 = vpow2.f32 %v508_v59  ;;  %v487_v24 = vmin.f32 %v2573_v30, 50.0  ;;  %v514_v38 = vmul.f32 1.442695, %v485_v27 }
  0xca   : > { %1687 = vpow2.f32 %v510_v33  ;;  %v1095_v41 = vsel %vm3039_vm12, 1.0, %v3029_v19  ;;  %v516_v44 = vmul.f32 1.442695, %v486_v52  ;;  %v1378_v62 = vadd.f32 %v2255_v63, %v1094_v6 }
  0xcb   : > { %v1247_v42 = vadd.f32 %v1246_v36, %v881_v0  ;;  %1689 = vpow2.f32 %v512_v61  ;;  %v1096_v53 = vsel %vm3038_vm13, 1.0, %v3029_v19  ;;  %vm3085_vm15 = vcmp.eq.s32.totalorder %v2148_v8, 1 }
  0xcc   : > { %v882_v37 = vsel %vm3085_vm15, %v2493_v55, 0.0  ;;  %v1379_v57 = vadd.f32 %v1378_v62, %v1095_v41  ;;  %1691 = vpow2.f32 %v514_v38  ;;  %v518_v58 = vmul.f32 1.442695, %v487_v24 }
  0xcd   : > { %v1676_v7 = vpop.eup %1675  ;;  %1693 = vpow2.f32 %v516_v44  ;;  %v2605_v25 = vadd.f32 %v1247_v42, %v882_v37  ;;  %vm3037_vm6 = vcmp.eq.s32.totalorder %v2157_v12, 2  ;;  %vm3036_vm0 = vcmp.eq.s32.totalorder %v2159_v13, 2 }
  0xce   : > { %v2596_v45 = vpop.eup %1677  ;;  %v565_v1 = vadd.f32 1.0, %v1676_v7  ;;  %v2601_v22 = vadd.f32 %v1379_v57, %v1096_v53  ;;  %vm3033_vm1 = vcmp.eq.s32.totalorder %v2162_v14, 2  ;;  %vm3032_vm2 = vcmp.eq.s32.totalorder %v2165_v15, 2 }
  0xcf   : > { %v2598_v48 = vpop.eup %1679  ;;  %v574_v63 = vadd.f32 1.0, %v2596_v45  ;;  %v568_v26 = vmul.f32 -0.5, %v1676_v7  ;;  %vm3031_vm3 = vcmp.eq.s32.totalorder %v2167_v16, 2  ;;  %v571_v43 = vand.u32 2147483647, %v1676_v7 }
  0xd0   : > { %v2603_v49 = vpop.eup %1681  ;;  %1695 = vlog2.f32 %v565_v1  ;;  %v583_v8 = vadd.f32 1.0, %v2598_v48  ;;  %vm3028_vm7 = vcmp.eq.s32.totalorder %v2170_v17, 2  ;;  %v2622_v39 = vsel %vm3037_vm6, 1.0, %v3029_v19 }
  0xd1   : > { %v2609_v55 = vpop.eup %1683  ;;  %1697 = vlog2.f32 %v574_v63  ;;  %v592_v28 = vadd.f32 1.0, %v2603_v49  ;;  %v577_v60 = vmul.f32 -0.5, %v2596_v45  ;;  %v2631_v32 = vsel %vm3036_vm0, 1.0, %v3029_v19 }
  0xd2   : > { %1699 = vpow2.f32 %v518_v58  ;;  %v601_v29 = vadd.f32 1.0, %v2609_v55  ;;  %v2636_v5 = vsel %vm3033_vm1, 1.0, %v3029_v19  ;;  %v586_v47 = vmul.f32 -0.5, %v2598_v48 }
  0xd3   : > { %v2616_v4 = vpop.eup %1685  ;;  %1701 = vlog2.f32 %v583_v8  ;;  %v2642_v59 = vsel %vm3032_vm2, 1.0, %v3029_v19  ;;  %v2647_v27 = vsel %vm3031_vm3, 1.0, %v3029_v19  ;;  %v569_v52 = vadd.f32 1.0, %v568_v26 }
  0xd4   : > { %v2624_v34 = vpop.eup %1687  ;;  %1703 = vlog2.f32 %v592_v28  ;;  %3086 = vst [vmem:[#allocation20_spill] sm:$0xff] %v2642_v59  ;;  %3087 = vst [vmem:[#allocation21_spill] sm:$0xff] %v2647_v27  ;;  %v580_v36 = vand.u32 2147483647, %v2596_v45  ;;  %v595_v61 = vmul.f32 -0.5, %v2603_v49  ;;  %v610_v6 = vadd.f32 1.0, %v2616_v4 }
  0xd5   : > { %v2649_v33 = vpop.eup %1689  ;;  %vm2654_vm8 = vcmp.lt.f32.partialorder %v571_v43, 0.0004427343  ;;  %1705 = vlog2.f32 %v601_v29  ;;  %v619_v24 = vadd.f32 1.0, %v2624_v34  ;;  %v2662_v38 = vsel %vm3028_vm7, 1.0, %v3029_v19 }
  0xd6   : > { %3090 = vst [vmem:[#allocation22_spill] sm:$0xff] %v2662_v38  ;;  %v2664_v41 = vpop.eup %1691  ;;  %v578_v44 = vadd.f32 1.0, %v577_v60  ;;  %v589_v62 = vand.u32 2147483647, %v2598_v48  ;;  %v604_v42 = vmul.f32 -0.5, %v2609_v55  ;;  %1707 = vlog2.f32 %v610_v6 }
  0xd7   : > { %v2668_v53 = vpop.eup %1693  ;;  %vm461_vm9 = vcmp.gt.f32.partialorder %v2507_v54, 50.0  ;;  %v587_v37 = vadd.f32 1.0, %v586_v47  ;;  %v598_v57 = vand.u32 2147483647, %v2603_v49  ;;  %v613_v58 = vmul.f32 -0.5, %v2616_v4 }
  0xd8   : > { %v628_v1 = vadd.f32 1.0, %v2649_v33  ;;  %vm462_vm11 = vcmp.gt.f32.partialorder %v2511_v21, 50.0  ;;  %v570_v8 = vmul.f32 %v1676_v7, %v569_v52  ;;  %vm2675_vm14 = vcmp.lt.f32.partialorder %v580_v36, 0.0004427343 }
  0xd9   : > { %v596_v28 = vadd.f32 1.0, %v595_v61  ;;  %1709 = vlog2.f32 %v619_v24  ;;  %v607_v60 = vand.u32 2147483647, %v2609_v55  ;;  %v622_v29 = vmul.f32 -0.5, %v2624_v34 }
  0xda   : > { %v1696_v63 = vpop.eup %1695  ;;  %1711 = vlog2.f32 %v628_v1  ;;  %v637_v47 = vadd.f32 1.0, %v2664_v41  ;;  %vm463_vm15 = vcmp.gt.f32.partialorder %v2520_v35, 50.0  ;;  %v579_v7 = vmul.f32 %v2596_v45, %v578_v44 }
  0xdb   : > { %v1698_v43 = vpop.eup %1697  ;;  %vm2686_vm7 = vcmp.lt.f32.partialorder %v589_v62, 0.0004427343  ;;  %v605_v36 = vadd.f32 1.0, %v604_v42  ;;  %v616_v61 = vand.u32 2147483647, %v2616_v4  ;;  %v588_v38 = vmul.f32 %v2598_v48, %v587_v37 }
  0xdc   : > { %v2682_v6 = vpop.eup %1699  ;;  %v567_v19 = vmul.f32 0.6931472, %v1696_v63  ;;  %vm2692_vm3 = vcmp.lt.f32.partialorder %v598_v57, 0.0004427343  ;;  %v614_v27 = vadd.f32 1.0, %v613_v58  ;;  %vm464_vm2 = vcmp.gt.f32.partialorder %v2526_v46, 50.0 }
  0xdd   : > { %v1702_v24 = vpop.eup %1701  ;;  %v576_v59 = vmul.f32 0.6931472, %v1698_v43  ;;  %v597_v45 = vmul.f32 %v2603_v49, %v596_v28  ;;  %v631_v44 = vmul.f32 -0.5, %v2649_v33  ;;  %v646_v62 = vadd.f32 1.0, %v2668_v53 }
  0xde   : > { %v1704_v42 = vpop.eup %1703  ;;  %vm2700_vm1 = vcmp.lt.f32.partialorder %v607_v60, 0.0004427343  ;;  %v623_v48 = vadd.f32 1.0, %v622_v29  ;;  %v625_v37 = vand.u32 2147483647, %v2624_v34  ;;  %1713 = vlog2.f32 %v637_v47 }
  0xdf   : > { %vm465_vm0 = vcmp.gt.f32.partialorder %v2528_v50, 50.0  ;;  %v585_v57 = vmul.f32 0.6931472, %v1702_v24  ;;  %v606_v58 = vmul.f32 %v2609_v55, %v605_v36  ;;  %vm2707_vm6 = vcmp.lt.f32.partialorder %v616_v61, 0.0004427343  ;;  %v1706_v28 = vpop.eup %1705 }
  0xe0   : > { %v655_v63 = vadd.f32 1.0, %v2682_v6  ;;  %vm466_vm13 = vcmp.gt.f32.partialorder %v2537_v51, 50.0  ;;  %v573_v43 = vsel %vm2654_vm8, %v570_v8, %v567_v19  ;;  %v615_v60 = vmul.f32 %v2616_v4, %v614_v27  ;;  %v1708_v47 = vpop.eup %1707 }
  0xe1   : > { %v634_v29 = vand.u32 2147483647, %v2649_v33  ;;  %1715 = vlog2.f32 %v646_v62  ;;  %v582_v55 = vsel %vm2675_vm14, %v579_v7, %v576_v59  ;;  %v594_v36 = vmul.f32 0.6931472, %v1704_v42 }
  0xe2   : > { %v632_v61 = vadd.f32 1.0, %v631_v44  ;;  %v640_v24 = vmul.f32 -0.5, %v2664_v41  ;;  %vm467_vm12 = vcmp.gt.f32.partialorder %v2544_v31, 50.0  ;;  %v624_v20 = vmul.f32 %v2624_v34, %v623_v48 }
  0xe3   : > { %vm2722_vm10 = vcmp.lt.f32.partialorder %v625_v37, 0.0004427343  ;;  %v643_v19 = vand.u32 2147483647, %v2664_v41  ;;  %1717 = vlog2.f32 %v655_v63  ;;  %v1710_v4 = vpop.eup %1709  ;;  %vm468_vm8 = vcmp.gt.f32.partialorder %v2554_v2, 50.0 }
  0xe4   : > { %v591_v59 = vsel %vm2686_vm7, %v588_v38, %v585_v57  ;;  %v603_v27 = vmul.f32 0.6931472, %v1706_v28  ;;  %v649_v8 = vmul.f32 -0.5, %v2668_v53  ;;  %v2734_v34 = vsel %vm461_vm9, %v2507_v54, %v573_v43  ;;  %v1712_v26 = vpop.eup %1711 }
  0xe5   : > { %v612_v7 = vmul.f32 0.6931472, %v1708_v47  ;;  %vm2736_vm14 = vcmp.lt.f32.partialorder %v634_v29, 0.0004427343  ;;  %v658_v62 = vmul.f32 -0.5, %v2682_v6  ;;  %v2744_v38 = vsel %vm462_vm11, %v2511_v21, %v582_v55 }
  0xe6   : > { %v600_v52 = vsel %vm2692_vm3, %v597_v45, %v594_v36  ;;  %v633_v42 = vmul.f32 %v2649_v33, %v632_v61  ;;  %v641_v54 = vadd.f32 1.0, %v640_v24  ;;  %v652_v48 = vand.u32 2147483647, %v2668_v53 }
  0xe7   : > { %v621_v37 = vmul.f32 0.6931472, %v1710_v4  ;;  %vm2750_vm7 = vcmp.lt.f32.partialorder %v643_v19, 0.0004427343  ;;  %v2757_v63 = vsel %vm463_vm15, %v2520_v35, %v591_v59  ;;  %v883_v21 = vsel %vm850_vm5, %v2734_v34, 0.0 }
  0xe8   : > { %vm469_vm3 = vcmp.gt.f32.partialorder %v2556_v3, 50.0  ;;  %v609_v33 = vsel %vm2700_vm1, %v606_v58, %v603_v27  ;;  %v630_v1 = vmul.f32 0.6931472, %v1712_v26  ;;  %v650_v45 = vadd.f32 1.0, %v649_v8  ;;  %v1714_v43 = vpop.eup %1713 }
  0xe9   : > { %vm3107_vm9 = vcmp.eq.s32.totalorder %v2152_v10, 1  ;;  %v618_v35 = vsel %vm2707_vm6, %v615_v60, %v612_v7  ;;  %v659_v29 = vadd.f32 1.0, %v658_v62  ;;  %v2773_v47 = vsel %vm464_vm2, %v2526_v46, %v600_v52 }
  0xea   : > { %v884_v28 = vsel %vm3107_vm9, %v2744_v38, 0.0  ;;  %v1249_v55 = vadd.f32 %v2605_v25, %v883_v21  ;;  %vm470_vm5 = vcmp.gt.f32.partialorder %v2565_v56, 50.0  ;;  %v642_v17 = vmul.f32 %v2664_v41, %v641_v54 }
  0xeb   : > { %vm2778_vm1 = vcmp.lt.f32.partialorder %v652_v48, 0.0004427343  ;;  %v661_v36 = vand.u32 2147483647, %v2682_v6  ;;  %vm3110_vm6 = vcmp.eq.s32.totalorder %v2155_v11, 1  ;;  %v1716_v60 = vpop.eup %1715  ;;  %v627_v46 = vsel %vm2722_vm10, %v624_v20, %v621_v37 }
  0xec   : > { %v885_v49 = vsel %vm3110_vm6, %v2757_v63, 0.0  ;;  %v2791_v25 = vsel %vm465_vm0, %v2528_v50, %v609_v33  ;;  %v1250_v41 = vadd.f32 %v1249_v55, %v884_v28  ;;  %vm3111_vm2 = vcmp.eq.s32.totalorder %v2150_v9, 0 }
  0xed   : > { %v737_v61 = vsel %vm3111_vm2, %v2734_v34, 0.0  ;;  %vm471_vm11 = vcmp.gt.f32.partialorder %v2573_v30, 50.0  ;;  %v636_v24 = vsel %vm2736_vm14, %v633_v42, %v630_v1  ;;  %v639_v19 = vmul.f32 0.6931472, %v1714_v43  ;;  %v1718_v0 = vpop.eup %1717 }
  0xee   : > { %v2802_v20 = vsel %vm466_vm13, %v2537_v51, %v618_v35  ;;  %v886_v50 = vsel %vm853_vm4, %v2773_v47, 0.0  ;;  %v651_v4 = vmul.f32 %v2668_v53, %v650_v45  ;;  %v660_v59 = vmul.f32 %v2682_v6, %v659_v29 }
  0xef   : > { %v1251_v27 = vadd.f32 %v1250_v41, %v885_v49  ;;  %vm3112_vm10 = vcmp.eq.s32.totalorder %v2152_v10, 0  ;;  %v648_v26 = vmul.f32 0.6931472, %v1716_v60  ;;  %v2815_v51 = vsel %vm467_vm12, %v2544_v31, %v627_v46 }
  0xf0   : > { %v738_v8 = vsel %vm3112_vm10, %v2744_v38, 0.0  ;;  %vm3113_vm13 = vcmp.eq.s32.totalorder %v2159_v13, 1  ;;  %v1163_v44 = vadd.f32 %v2533_v40, %v737_v61  ;;  %vm1005_vm4 = vcmp.eq.s32.totalorder %v2175_v18, 2 }
  0xf1   : > { %v887_v7 = vsel %vm3113_vm13, %v2791_v25, 0.0  ;;  %v2825_v53 = vsel %vm468_vm8, %v2554_v2, %v636_v24  ;;  %vm3114_vm0 = vcmp.eq.s32.totalorder %v2162_v14, 1  ;;  %v1252_v62 = vadd.f32 %v1251_v27, %v886_v50  ;;  %v3132_v50 = vld [vmem:[#allocation21_spill] sm:$0xff] }
  0xf2   : > { %v888_v6 = vsel %vm3114_vm0, %v2802_v20, 0.0  ;;  %vm3115_vm12 = vcmp.eq.s32.totalorder %v2155_v11, 0  ;;  %v645_v52 = vsel %vm2750_vm7, %v642_v17, %v639_v19  ;;  %v657_v40 = vmul.f32 0.6931472, %v1718_v0  ;;  %v3125_v17 = vld [vmem:[#allocation19_spill] sm:$0xff] }
  0xf3   : > { %v739_v31 = vsel %vm3115_vm12, %v2757_v63, 0.0  ;;  %v1164_v42 = vadd.f32 %v1163_v44, %v738_v8  ;;  %v1381_v54 = vadd.f32 %v2601_v22, %v2622_v39  ;;  %vm2837_vm15 = vcmp.lt.f32.partialorder %v661_v36, 0.0004427343  ;;  %v3126_v36 = vld [vmem:[#allocation18_spill] sm:$0xff] }
  0xf4   : > { %vm3118_vm8 = vcmp.eq.s32.totalorder %v2165_v15, 1  ;;  %v1253_v37 = vadd.f32 %v1252_v62, %v887_v7  ;;  %vm3119_vm14 = vcmp.eq.s32.totalorder %v2157_v12, 0  ;;  %vm1006_vm7 = vcmp.eq.s32.totalorder %v2263_v23, 2  ;;  %v3137_v7 = vld [vmem:[#allocation22_spill] sm:$0xff] }
  0xf5   : > { %v889_v48 = vsel %vm3118_vm8, %v2815_v51, 0.0  ;;  %v740_v21 = vsel %vm3119_vm14, %v2773_v47, 0.0  ;;  %v654_v57 = vsel %vm2778_vm1, %v651_v4, %v648_v26  ;;  %v1165_v33 = vadd.f32 %v1164_v42, %v739_v31 }
  0xf6   : > { %v1382_v22 = vadd.f32 %v1381_v54, %v2631_v32  ;;  %vm3120_vm9 = vcmp.eq.s32.totalorder %v2150_v9, 2  ;;  %v677_v1 = vsel %vm469_vm3, %v2556_v3, %v645_v52  ;;  %vm3121_vm6 = vcmp.eq.s32.totalorder %v2167_v16, 1 }
  0xf7   : > { %v1029_v39 = vsel %vm3120_vm9, %v2734_v34, 0.0  ;;  %v890_v45 = vsel %vm3121_vm6, %v2825_v53, 0.0  ;;  %v1254_v28 = vadd.f32 %v1253_v37, %v888_v6  ;;  %vm3122_vm2 = vcmp.eq.s32.totalorder %v2159_v13, 0 }
  0xf8   : > { %v741_v43 = vsel %vm3122_vm2, %v2791_v25, 0.0  ;;  %v663_v32 = vsel %vm2837_vm15, %v660_v59, %v657_v40  ;;  %v1166_v35 = vadd.f32 %v1165_v33, %v740_v21  ;;  %v1383_v9 = vadd.f32 %v1382_v22, %v2636_v5  ;;  %v3128_v5 = vld [vmem:[#allocation20_spill] sm:$0xff] }
  0xf9   : > { %vm3123_vm1 = vcmp.eq.s32.totalorder %v2152_v10, 2  ;;  %v678_v3 = vsel %vm470_vm5, %v2565_v56, %v654_v57  ;;  %v1255_v29 = vadd.f32 %v1254_v28, %v889_v48  ;;  %vm3124_vm3 = vcmp.eq.s32.totalorder %v2162_v14, 0 }
  0xfa   : > { %v1030_v34 = vsel %vm3123_vm1, %v2744_v38, 0.0  ;;  %v742_v55 = vsel %vm3124_vm3, %v2802_v20, 0.0  ;;  %v1335_v58 = vadd.f32 %v3125_v17, %v1029_v39  ;;  %vm3127_vm10 = vcmp.eq.s32.totalorder %v3126_v36, 1 }
  0xfb   : > { %v891_v49 = vsel %vm3127_vm10, %v677_v1, 0.0  ;;  %v1167_v60 = vadd.f32 %v1166_v35, %v741_v43  ;;  %v1384_v46 = vadd.f32 %v1383_v9, %v3128_v5  ;;  %vm3129_vm13 = vcmp.eq.s32.totalorder %v2155_v11, 2 }
  0xfc   : > { %v1031_v10 = vsel %vm3129_vm13, %v2757_v63, 0.0  ;;  %v679_v56 = vsel %vm471_vm11, %v2573_v30, %v663_v32  ;;  %v1256_v38 = vadd.f32 %v1255_v29, %v890_v45  ;;  %vm3130_vm5 = vcmp.eq.s32.totalorder %v2165_v15, 0 }
  0xfd   : > { %v743_v41 = vsel %vm3130_vm5, %v2815_v51, 0.0  ;;  %v1336_v61 = vadd.f32 %v1335_v58, %v1030_v34  ;;  %vm3131_vm0 = vcmp.eq.s32.totalorder %v2175_v18, 1  ;;  %v1168_v19 = vadd.f32 %v1167_v60, %v742_v55 }
  0xfe   : > { %v892_v24 = vsel %vm3131_vm0, %v678_v3, 0.0  ;;  %v1385_v0 = vadd.f32 %v1384_v46, %v3132_v50  ;;  %vm3133_vm12 = vcmp.eq.s32.totalorder %v2157_v12, 2  ;;  %v1257_v63 = vadd.f32 %v1256_v38, %v891_v49 }
  0xff   : > { %v1032_v11 = vsel %vm3133_vm12, %v2773_v47, 0.0  ;;  %vm3134_vm11 = vcmp.eq.s32.totalorder %v2167_v16, 0  ;;  %v3135_v4 = vmov 0.0   ;;  %v1337_v27 = vadd.f32 %v1336_v61, %v1031_v10 }
 0x100   : > { %v744_v30 = vsel %vm3134_vm11, %v2825_v53, 0.0  ;;  %v1103_v59 = vsel %vm1005_vm4, 1.0, %v3135_v4  ;;  %vm3136_vm15 = vcmp.eq.s32.totalorder %v2263_v23, 1  ;;  %v1169_v26 = vadd.f32 %v1168_v19, %v743_v41 }
 0x101   : > { %v893_v8 = vsel %vm3136_vm15, %v679_v56, 0.0  ;;  %v1386_v44 = vadd.f32 %v1385_v0, %v3137_v7  ;;  %vm3138_vm8 = vcmp.eq.s32.totalorder %v2159_v13, 2  ;;  %v1258_v47 = vadd.f32 %v1257_v63, %v892_v24 }
 0x102   : > { %v1033_v12 = vsel %vm3138_vm8, %v2791_v25, 0.0  ;;  %vm3139_vm14 = vcmp.eq.s32.totalorder %v3126_v36, 0  ;;  %v1338_v62 = vadd.f32 %v1337_v27, %v1032_v11  ;;  %v1170_v31 = vadd.f32 %v1169_v26, %v744_v30 }
 0x103   : > { %v745_v6 = vsel %vm3139_vm14, %v677_v1, 0.0  ;;  %v1104_v52 = vsel %vm1006_vm7, 1.0, %v3135_v4  ;;  %v1387_v40 = vadd.f32 %v1386_v44, %v1103_v59  ;;  %vm3140_vm9 = vcmp.eq.s32.totalorder %v2162_v14, 2 }
 0x104   : > { %v1034_v42 = vsel %vm3140_vm9, %v2802_v20, 0.0  ;;  %v1259_v54 = vadd.f32 %v1258_v47, %v893_v8  ;;  %vm3141_vm6 = vcmp.eq.s32.totalorder %v2175_v18, 0  ;;  %v1339_v25 = vadd.f32 %v1338_v62, %v1033_v12 }
 0x105   : > { %v746_v13 = vsel %vm3141_vm6, %v678_v3, 0.0  ;;  %v1171_v2 = vadd.f32 %v1170_v31, %v745_v6  ;;  %vm3142_vm2 = vcmp.eq.s32.totalorder %v2165_v15, 2  ;;  %vm3143_vm1 = vcmp.eq.s32.totalorder %v2263_v23, 0 }
 0x106   : > { %v1035_v48 = vsel %vm3142_vm2, %v2815_v51, 0.0  ;;  %1260 = vadd.xlane.f32.xlu1 %v1259_v54  ;;  %v747_v37 = vsel %vm3143_vm1, %v679_v56, 0.0  ;;  %v1388_v21 = vadd.f32 %v1387_v40, %v1104_v52  ;;  %v1340_v57 = vadd.f32 %v1339_v25, %v1034_v42 }
 0x107   : > { %v1172_v33 = vadd.f32 %v1171_v2, %v746_v13  ;;  %vm3144_vm3 = vcmp.eq.s32.totalorder %v2167_v16, 2  ;;  %vm3145_vm10 = vcmp.eq.s32.totalorder %v3126_v36, 2  ;;  %v1038_v15 = vsel %vm1005_vm4, %v678_v3, 0.0 }
 0x108   : > { %v1036_v14 = vsel %vm3144_vm3, %v2825_v53, 0.0  ;;  %v1341_v20 = vadd.f32 %v1340_v57, %v1035_v48  ;;  %v1037_v39 = vsel %vm3145_vm10, %v677_v1, 0.0  ;;  %v1039_v28 = vsel %vm1006_vm7, %v679_v56, 0.0 }
 0x109   : > { %v1173_v22 = vadd.f32 %v1172_v33, %v747_v37  ;;  %v1140_v52 = vlaneseq }
 0x10a   : > { %1389 = vadd.xlane.f32.xlu1 %v1388_v21  ;;  %v1342_v45 = vadd.f32 %v1341_v20, %v1036_v14 }
 0x10b   : > { %1174 = vadd.xlane.f32.xlu0 %v1173_v22  ;;  %v1141_v40 = vshrl.u32 %v1140_v52, 7 }
 0x10c   : > { %v1343_v51 = vadd.f32 %v1342_v45, %v1037_v39 }
 0x10d   : > { %vm1142_vm4 = vcmp.eq.s32.totalorder %v1141_v40, 0  ;;  %vm1185_vm7 = vcmp.eq.s32.totalorder %v1141_v40, 1  ;;  %vm1228_vm13 = vcmp.eq.s32.totalorder %v1141_v40, 2  ;;  %vm1271_vm5 = vcmp.eq.s32.totalorder %v1141_v40, 3 }
 0x10e   : > { %v1344_v43 = vadd.f32 %v1343_v51, %v1038_v15  ;;  %vm1314_vm0 = vcmp.eq.s32.totalorder %v1141_v40, 4  ;;  %vm1357_vm12 = vcmp.eq.s32.totalorder %v1141_v40, 5 }
 0x110   : > { %v1345_v32 = vadd.f32 %v1344_v43, %v1039_v28 }
 0x112   : > { %1346 = vadd.xlane.f32.xlu0 %v1345_v32 }
 0x137   : > { %v1218_v16 = vpop.xlane.xlu0 %1217 }
 0x138   : > { %v1219_v35 = vrot.slane %v1218_v16, 4 }
 0x13a   : > { %v1220_v29 = vadd.f32 %v1219_v35, %v1218_v16 }
 0x13c   : > { %v1221_v36 = vrot.slane %v1220_v29, 2 }
 0x13e   : > { %v1222_v56 = vadd.f32 %v1221_v36, %v1220_v29 }
 0x140   : > { %v1223_v11 = vrot.slane %v1222_v56, 1 }
 0x142   : > { %v1224_v7 = vadd.f32 %v1223_v11, %v1222_v56 }
 0x153   : > { %v1304_v53 = vpop.xlane.xlu1 %1303 }
 0x154   : > { %v1305_v9 = vrot.slane %v1304_v53, 4 }
 0x156   : > { %v1306_v55 = vadd.f32 %v1305_v9, %v1304_v53 }
 0x158   : > { %v1307_v23 = vrot.slane %v1306_v55, 2 }
 0x15a   : > { %v1308_v61 = vadd.f32 %v1307_v23, %v1306_v55 }
 0x15c   : > { %v1309_v59 = vrot.slane %v1308_v61, 1 }
 0x15e   : > { %v1310_v47 = vadd.f32 %v1309_v59, %v1308_v61 }
 0x193   : > { %v1261_v34 = vpop.xlane.xlu1 %1260 }
 0x194   : > { %v1262_v1 = vrot.slane %v1261_v34, 4 }
 0x196   : > { %v1263_v17 = vadd.f32 %v1262_v1, %v1261_v34 }
 0x197   : > { %v1390_v58 = vpop.xlane.xlu1 %1389 }
 0x198   : > { %v1264_v18 = vrot.slane %v1263_v17, 2  ;;  %v1175_v3 = vpop.xlane.xlu0 %1174  ;;  %v1391_v49 = vrot.slane %v1390_v58, 4 }
 0x199   : > { %v1176_v60 = vrot.slane %v1175_v3, 4 }
 0x19a   : > { %v1392_v5 = vadd.f32 %v1391_v49, %v1390_v58  ;;  %v1265_v10 = vadd.f32 %v1264_v18, %v1263_v17 }
 0x19b   : > { %v1177_v46 = vadd.f32 %v1176_v60, %v1175_v3 }
 0x19c   : > { %v1393_v41 = vrot.slane %v1392_v5, 2  ;;  %v1266_v50 = vrot.slane %v1265_v10, 1 }
 0x19d   : > { %v1178_v38 = vrot.slane %v1177_v46, 2 }
 0x19e   : > { %v1394_v63 = vadd.f32 %v1393_v41, %v1392_v5  ;;  %v1267_v8 = vadd.f32 %v1266_v50, %v1265_v10 }
 0x19f   : > { %v1347_v24 = vpop.xlane.xlu0 %1346  ;;  %v1179_v19 = vadd.f32 %v1178_v38, %v1177_v46 }
 0x1a0   : > { %v1348_v0 = vrot.slane %v1347_v24, 4  ;;  %v1395_v44 = vrot.slane %v1394_v63, 1 }
 0x1a1   : > { %v1180_v30 = vrot.slane %v1179_v19, 1 }
 0x1a2   : > { %v1349_v4 = vadd.f32 %v1348_v0, %v1347_v24  ;;  %v1396_v62 = vadd.f32 %v1395_v44, %v1394_v63 }
 0x1a3   : > { %v1181_v27 = vadd.f32 %v1180_v30, %v1179_v19 }
 0x1a4   : > { %v1350_v26 = vrot.slane %v1349_v4, 2 }
 0x1a5   : > { %1568 = vpush %v1181_v27 }
 0x1a6   : > { %v1351_v12 = vadd.f32 %v1350_v26, %v1349_v4  ;;  %1570 = vpush %v1224_v7 }
 0x1a7   : > { %1572 = vpush %v1267_v8 }
 0x1a8   : > { %1574 = vpush %v1310_v47  ;;  %v1352_v6 = vrot.slane %v1351_v12, 1 }
 0x1aa   : > { %v1353_v31 = vadd.f32 %v1352_v6, %v1351_v12 }
 0x1ac   : > { %1576 = vpush %v1353_v31 }
 0x1ad   : > { %1578 = vpush %v1396_v62 }
 0x1d6   : > { %s1569_s18 = spop %1568 }
 0x1d7   : > { %v1183_v42 = vstv %s1569_s18  ;;  %s1571_s19 = spop %1570 }
 0x1d8   : > { %v1184_v54 = vsel %vm1142_vm4, %v1183_v42, 0.0  ;;  %v1226_v13 = vstv %s1571_s19  ;;  %s1573_s5 = spop %1572 }
 0x1d9   : > { %v1227_v25 = vsel %vm1185_vm7, %v1226_v13, %v1184_v54  ;;  %v1269_v2 = vstv %s1573_s5  ;;  %s1575_s30 = spop %1574 }
 0x1da   : > { %v1270_v48 = vsel %vm1228_vm13, %v1269_v2, %v1227_v25  ;;  %v1312_v37 = vstv %s1575_s30 }
 0x1db   : > { %v1313_v21 = vsel %vm1271_vm5, %v1312_v37, %v1270_v48 }
 0x1dd   : > { %s1577_s7 = spop %1576 }
 0x1de   : > { %v1355_v57 = vstv %s1577_s7  ;;  %s1579_s20 = spop %1578 }
 0x1df   : > { %v1356_v33 = vsel %vm1314_vm0, %v1355_v57, %v1313_v21  ;;  %v1398_v14 = vstv %s1579_s20 }
 0x1e0   : > { %v1399_v20 = vsel %vm1357_vm12, %v1398_v14, %v1356_v33 }
 0x1e1   : > { %1400 = vst [vmem:[%s286_s29] sm:$0xff] %v1399_v20 }
 0x1e2   : > { %1822 = shalt.err (!%p1819_p13)
}
 0x1e3   : > { %s1823_s0 = scalar_lea.hbm %s2935_s23, 128  ;;  %s1827_s11 = scalar_lea.hbm %s2987_s3, 256 }
 0x1e4   : > { %p1824_p11 = scmp.ne.s32.totalorder %s2935_s23, %s1823_s0  ;;  %p1828_p7 = scmp.lt.u32.totalorder %s2935_s23, %s2987_s3 }
 0x1e5   : > { %p1829_p3 = scmp.lt.u32.totalorder %s1827_s11, %s1823_s0  ;;  %p1831_p0 = scmp.lt.u32.totalorder %s1823_s0, %s2935_s23 }
 0x1e6   : > { %p1825_p2 = pnand %p1824_p11, %p3146_p10 }
 0x1e7   : > { %p1830_p4 = por %p1829_p3, %p1828_p7 }
 0x1e8   : > { %p1826_p5 = pneg %p1825_p2 }
 0x1e9   : > { %p1832_p8 = por %p1831_p0, %p1830_p4 }
 0x1eb   : > { %p1833_p9 = pnand %p1832_p8, %p1826_p5 }
 0x1ed   : > { %1836 = shalt.err (!%p1833_p9)
}
 0x1ee   : > { %1586 = dma.vmem_to_hbm [thread:$0]  (%p3146_p10), %s2937_s6, 128, %s2935_s23, %s1402_s15  }
 0x1ef PF: > { %s3147_s10 = sld [smem:[#allocation17_spill]]  ;;  %s3148_s18 = sld [smem:[#allocation14_spill]] }
 0x1f0   : > { %s1427_s24 = sand.u32 1, %s1875_s12  }
 0x1f1   : > { %s1428_s19 = scalar_lea.sflag [#allocation5], %s1427_s24 }
 0x1f5   : > { %p3149_p12 = scmp.ne.s32.totalorder %s3147_s10, 0  ;;  %p3150_p1 = scmp.ge.s32.totalorder %s3148_s18, 2 }
 0x1f7   : > { %p1599_p6 = pnand %p3150_p1, %p3149_p12 }
 0x1f9   : > { %1870 = dma.done.wait (!%p1599_p6), %s1428_s19, 128  }
 0x1fa   : > { %1872 = vsyncadd (!%p1599_p6), %s1428_s19, 4294967168  ;;  %s22_s17 = sadd.s32 1, %s3148_s18   ;;  %s3151_s5 = sld [smem:[#allocation13_spill]] }
 0x1fb   : > { %p19_p13 = scmp.ge.s32.totalorder %s22_s17, 4   ;;  %s3152_s14 = sld [smem:[#allocation16_spill]] }
 0x1fc   : > { %s3153_s25 = sld [smem:[#allocation15_spill]]  ;;  %s3154_s12 = smov %s1879_s13 }
 0x1fd   : > { %s3156_s15 = smov %s1891_s16  ;;  %21 = sbr.rel (!%p19_p13) target bundleno = 11 (0xb), region = 114 }
 0x200   : > { %s3155_s13 = smov %s3151_s5 }
 0x202   : > { %s3157_s16 = smov %s3153_s25 }
 0x204   :  { %1433 = vsyncpa [#allocation4], 1 }
 0x205   :  { %1435 = vsyncpa [#allocation4 + $0x1], 1 }
 0x206   :  { %1436 = vsyncpa [#allocation7], 1 }
 0x207   :  { %1438 = vsyncpa [#allocation7 + $0x1], 1 }
 0x208   :  { %1439 = vsyncpa [#allocation5], 1 }
 0x209   :  { %1441 = vsyncpa [#allocation5 + $0x1], 1 }

</bundles_post_ra>
